<compile_context>
chip_gen: v7x
topology: tpu7x:2x2x1
jax: 0.10.0
libtpu: 0.0.40
codegen_flags: <defaults>
</compile_context>

<pallas_src>
import jax
import jax.numpy as jnp
from jax.experimental import pallas as pl
from jax.experimental.pallas import tpu as pltpu


def _lstm_head_kernel(x_ref,
                      wih0_ref, whh0_ref, b0_ref,
                      wih1_ref, whh1_ref, b1_ref,
                      wfc1_ref, bfc1_ref,
                      wfc2_ref, bfc2_ref,
                      wreg_ref, breg_ref,
                      out_ref,
                      gin_s):
    """Whole forward pass in one kernel invocation (all operands resident in VMEM).

    x_ref    : (T*Bp, IN)  bf16, time-major rows (row = t*Bp + b)
    wih0_ref : (IN, 4H)    bf16, g-columns pre-scaled by 2
    whh*_ref : (4H, 4H)    bf16, rows [3H,4H) hold W_hh^T (g-cols x2), other rows zero
    wih1_ref : (4H, 4H)    bf16, rows [3H,4H) hold W_ih^T of layer 1 (g-cols x2)
    wfc1_ref : (4H, H/2)   f32, rows [3H,4H) hold W_fc1^T, other rows zero
    gin_s    : VMEM (T*Bp, 4H) f32 scratch: precomputed layer-0 input-projection gates
    """
    TB, G = gin_s.shape           # G = 4H
    Bp = out_ref.shape[0]         # padded batch (multiple of 8)
    T = TB // Bp
    H = G // 4

    # g-gate (tanh) lane mask, hoisted out of the recurrent loop.
    lane = jax.lax.broadcasted_iota(jnp.int32, (Bp, G), 1)
    is_g = (lane >= 2 * H) & (lane < 3 * H)

    # ---- Layer-0 input projection: one batched MXU matmul, bias folded in. ----
    gin_s[...] = jnp.dot(x_ref[...], wih0_ref[...],
                         preferred_element_type=jnp.float32) + b0_ref[...]

    # Hoisted weight loads (bf16, zero rows outside [3H,4H)) and bias broadcast.
    whh0 = whh0_ref[...]
    wih1 = wih1_ref[...]
    whh1 = whh1_ref[...]
    b1 = jnp.broadcast_to(b1_ref[...], (Bp, G))   # hoist broadcast out of the loop

    def gate_combine(gates, c):
        # g-columns of `gates` hold 2*g_pre (weights pre-scaled), so one sigmoid
        # suffices: tanh(x) = 2*sigmoid(2x) - 1.  Layout [i|f|g|o] per H lanes.
        s = jax.nn.sigmoid(gates)                     # EUP, full tile
        act = jnp.where(is_g, 2.0 * s - 1.0, s)      # VPU select
        # XLU rotations (direction-agnostic):
        #   block [3H,4H) of roll(act, 2H)              -> sigmoid(f)
        #   block [3H,4H) of roll(act, H)*roll(act, 3H) -> sigmoid(i)*tanh(g)
        #   block [3H,4H) of act                        -> sigmoid(o)
        r1 = pltpu.roll(act, H, axis=1)
        r2 = pltpu.roll(act, 2 * H, axis=1)
        r3 = pltpu.roll(act, 3 * H, axis=1)
        c_new = r2 * c + r1 * r3                      # block3: f*c + i*g
        h_new = act * jnp.tanh(c_new)                 # block3: o*tanh(c)
        return h_new, c_new

    def layer1_step(h0_prev, h1, c1):
        g1 = (jnp.dot(h0_prev, wih1, preferred_element_type=jnp.float32) + b1
              + jnp.dot(h1, whh1, preferred_element_type=jnp.float32))
        return gate_combine(g1, c1)

    zeros_f32 = jnp.zeros((Bp, G), jnp.float32)

    # ---- Wavefront prologue: layer-0 step 0 (h0 = c0 = 0). ----
    h0f, c0 = gate_combine(gin_s[pl.ds(0, Bp), :], zeros_f32)
    h0 = h0f.astype(jnp.bfloat16)
    h1 = jnp.zeros((Bp, G), jnp.bfloat16)
    c1 = zeros_f32

    # ---- Wavefront main loop: iteration k runs layer-1 step k-1 and layer-0 step k.
    # The two steps only depend on the carried state, so they overlap in the schedule.
    def body(k, carry):
        h0, c0, h1, c1 = carry
        h1f, c1n = layer1_step(h0, h1, c1)            # layer-1 step k-1 (input = h0[k-1])
        row = pl.multiple_of(k * Bp, Bp)              # aligned sublane offset
        g0 = gin_s[pl.ds(row, Bp), :] + jnp.dot(h0, whh0,
                                                preferred_element_type=jnp.float32)
        h0f, c0n = gate_combine(g0, c0)               # layer-0 step k
        return h0f.astype(jnp.bfloat16), c0n, h1f.astype(jnp.bfloat16), c1n

    h0, c0, h1, c1 = jax.lax.fori_loop(1, T, body, (h0, c0, h1, c1), unroll=True)

    # ---- Wavefront epilogue: layer-1 step T-1; keep the f32 hidden for the head. ----
    h1_last, _ = layer1_step(h0, h1, c1)              # == hidden[-1] in block [3H,4H)

    # ---- MLP head: fc1 -> relu -> fc2 -> relu -> regressor (dropouts = identity). ----
    z = jnp.maximum(
        jnp.dot(h1_last, wfc1_ref[...], preferred_element_type=jnp.float32)
        + bfc1_ref[...], 0.0)
    z = jnp.maximum(
        jnp.dot(z, wfc2_ref[...], preferred_element_type=jnp.float32)
        + bfc2_ref[...], 0.0)
    # N=1 regressor as a lane reduction instead of a 1-column MXU matmul.
    out_ref[...] = (jnp.sum(z * wreg_ref[...], axis=-1, keepdims=True)
                    + breg_ref[...])


def lstm_model_forward(x, params):
    """x: (B, T, input_size) float32.  params: dict from pack_params (pre-transposed/padded)."""
    B, T, _ = x.shape
    H = params["whh0_t"].shape[-1] // 4
    Bp = ((B + 7) // 8) * 8                       # pad batch to sublane granularity

    # Time-major, batch-padded, flattened 2-D slab so the kernel never slices the
    # middle dim of (B, T, IN); bf16 for the batched MXU input projection.
    xt = jnp.transpose(x, (1, 0, 2))              # (T, B, IN)
    xt = jnp.pad(xt, ((0, 0), (0, Bp - B), (0, 0)))
    x2d = xt.reshape(T * Bp, -1).astype(jnp.bfloat16)

    flat = (
        params["wih0_t"], params["whh0_t"], params["b0"],
        params["wih1_t"], params["whh1_t"], params["b1"],
        params["wfc1_t"], params["bfc1"],
        params["wfc2_t"], params["bfc2"],
        params["wreg_t"], params["breg"],
    )
    n_in = 1 + len(flat)
    out = pl.pallas_call(
        _lstm_head_kernel,
        out_shape=jax.ShapeDtypeStruct((Bp, 1), jnp.float32),
        in_specs=[pl.BlockSpec(memory_space=pltpu.MemorySpace.VMEM)] * n_in,
        out_specs=pl.BlockSpec(memory_space=pltpu.MemorySpace.VMEM),
        scratch_shapes=[
            pltpu.VMEM((T * Bp, 4 * H), jnp.float32),   # gin_s: layer-0 input gates
        ],
    )(x2d, *flat)
    return out[:B]


def init_params(key, input_size, hidden_size):
    """Deterministic synthetic parameters with PyTorch LSTMModel shapes (gate order [i,f,g,o])."""
    H = hidden_size
    G = 4 * H
    ks = jax.random.split(key, 14)
    bound = 1.0 / jnp.sqrt(jnp.float32(H))

    def u(k, shape):
        return jax.random.uniform(k, shape, jnp.float32, -bound, bound)

    return dict(
        wih0=u(ks[0], (G, input_size)),
        whh0=u(ks[1], (G, H)),
        b0=u(ks[2], (G,)) + u(ks[3], (G,)),          # b_ih + b_hh fused
        wih1=u(ks[4], (G, H)),
        whh1=u(ks[5], (G, H)),
        b1=u(ks[6], (G,)) + u(ks[7], (G,)),
        wfc1=u(ks[8], (H // 2, H)),
        bfc1=u(ks[9], (H // 2,)),
        wfc2=u(ks[10], (H // 4, H // 2)),
        bfc2=u(ks[11], (H // 4,)),
        wreg=u(ks[12], (1, H // 4)),
        breg=u(ks[13], (1,)),
    )


def pack_params(raw, hidden_size):
    """Kernel-ready parameters: transposed, zero-row padded, g-columns x2, bf16 MXU operands."""
    H = hidden_size
    G = 4 * H

    def scale_g_cols(w_t):
        # Scale the g-gate columns [2H,3H) by 2 so the kernel can use a single
        # sigmoid per step via tanh(x) = 2*sigmoid(2x) - 1.  (Power-of-2 scale:
        # exact in bf16.)  Gate ORDER is unchanged so the roll algebra holds.
        return w_t.at[..., 2 * H:3 * H].multiply(2.0)

    def pad_rows(w_t):
        # (H, N) -> (4H, N): live rows in block [3H,4H), zeros elsewhere so the
        # junk lanes of the 4H-wide hidden state contribute exactly nothing.
        return jnp.zeros((G,) + w_t.shape[1:], jnp.float32).at[3 * H:].set(w_t)

    return dict(
        wih0_t=scale_g_cols(raw["wih0"].T).astype(jnp.bfloat16),             # (IN, 4H)
        whh0_t=scale_g_cols(pad_rows(raw["whh0"].T)).astype(jnp.bfloat16),   # (4H, 4H)
        b0=scale_g_cols(raw["b0"].reshape(1, -1)),                           # (1, 4H) f32
        wih1_t=scale_g_cols(pad_rows(raw["wih1"].T)).astype(jnp.bfloat16),   # (4H, 4H)
        whh1_t=scale_g_cols(pad_rows(raw["whh1"].T)).astype(jnp.bfloat16),   # (4H, 4H)
        b1=scale_g_cols(raw["b1"].reshape(1, -1)),
        wfc1_t=pad_rows(raw["wfc1"].T),                                      # (4H, H/2) f32
        bfc1=raw["bfc1"].reshape(1, -1),
        wfc2_t=raw["wfc2"].T, bfc2=raw["bfc2"].reshape(1, -1),
        wreg_t=raw["wreg"],                                                  # (1, H/4)
        breg=raw["breg"].reshape(1, 1),
    )


def _reference_forward(x, raw):
    """Pure-JAX reference (PyTorch inference semantics, same bf16 MXU-operand casts as the kernel)."""
    B, T, _ = x.shape
    H = raw["whh0"].shape[-1]

    def lstm_layer(inp, wih, whh, b):       # inp: (B, T, F) f32; wih (4H,F); whh (4H,H)
        wih_t = wih.T.astype(jnp.bfloat16)
        whh_t = whh.T.astype(jnp.bfloat16)
        h = jnp.zeros((B, H), jnp.float32)
        c = jnp.zeros((B, H), jnp.float32)
        outs = []
        for t in range(T):
            g = (jnp.dot(inp[:, t].astype(jnp.bfloat16), wih_t,
                         preferred_element_type=jnp.float32)
                 + jnp.dot(h.astype(jnp.bfloat16), whh_t,
                           preferred_element_type=jnp.float32)
                 + b.reshape(1, -1))
            i_g = jax.nn.sigmoid(g[:, :H])
            f_g = jax.nn.sigmoid(g[:, H:2 * H])
            g_g = jnp.tanh(g[:, 2 * H:3 * H])
            o_g = jax.nn.sigmoid(g[:, 3 * H:])
            c = f_g * c + i_g * g_g
            h = o_g * jnp.tanh(c)
            outs.append(h)
        return jnp.stack(outs, axis=1), h

    outs0, _ = lstm_layer(x, raw["wih0"], raw["whh0"], raw["b0"])
    _, h_last = lstm_layer(outs0, raw["wih1"], raw["whh1"], raw["b1"])
    z = jnp.maximum(jnp.dot(h_last, raw["wfc1"].T) + raw["bfc1"], 0.0)
    z = jnp.maximum(jnp.dot(z, raw["wfc2"].T) + raw["bfc2"], 0.0)
    return (jnp.sum(z * raw["wreg"], axis=-1, keepdims=True)
            + raw["breg"].reshape(1, 1))


if __name__ == "__main__":
    # Small shapes: batch=2, seq=8, input_size=16, hidden_size=32, num_layers=2.
    B, T, IN, H = 2, 8, 16, 32
    key = jax.random.PRNGKey(0)
    k_x, k_p = jax.random.split(key)
    x = jax.random.normal(k_x, (B, T, IN), jnp.float32)

    raw = init_params(k_p, IN, H)
    params = pack_params(raw, H)

    out = jax.jit(lstm_model_forward)(x, params)
    out = jax.block_until_ready(out)
    assert out.shape == (B, 1) and out.dtype == jnp.float32

    ref = _reference_forward(x, raw)
    assert jnp.allclose(out, ref, atol=5e-3, rtol=5e-3), (out, ref)
    print("KERNEL_OK")
</pallas_src>

<mosaic_0001>
module attributes {stable_mosaic.version = 11 : i64} {
  func.func @_lstm_head_kernel(%arg0: memref<64x16xbf16, #tpu.memory_space<vmem>>, %arg1: memref<16x128xbf16, #tpu.memory_space<vmem>>, %arg2: memref<128x128xbf16, #tpu.memory_space<vmem>>, %arg3: memref<1x128xf32, #tpu.memory_space<vmem>>, %arg4: memref<128x128xbf16, #tpu.memory_space<vmem>>, %arg5: memref<128x128xbf16, #tpu.memory_space<vmem>>, %arg6: memref<1x128xf32, #tpu.memory_space<vmem>>, %arg7: memref<128x16xf32, #tpu.memory_space<vmem>>, %arg8: memref<1x16xf32, #tpu.memory_space<vmem>>, %arg9: memref<16x8xf32, #tpu.memory_space<vmem>>, %arg10: memref<1x8xf32, #tpu.memory_space<vmem>>, %arg11: memref<1x8xf32, #tpu.memory_space<vmem>>, %arg12: memref<1x1xf32, #tpu.memory_space<vmem>>, %arg13: memref<8x1xf32, #tpu.memory_space<vmem>>, %arg14: memref<64x128xf32, #tpu.memory_space<vmem>>) attributes {dimension_semantics = [], scalar_prefetch = 0 : i64, scratch_operands = 1 : i64, tpu.core_type = #tpu.core_type<tc>} {
    %0 = tpu.iota {dimensions = array<i32: 1>} : vector<8x128xi32>
    %c64_i32 = arith.constant 64 : i32
    %1 = vector.broadcast %c64_i32 : i32 to vector<8x128xi32>
    %2 = arith.cmpi sge, %0, %1 : vector<8x128xi32>
    %c96_i32 = arith.constant 96 : i32
    %3 = vector.broadcast %c96_i32 : i32 to vector<8x128xi32>
    %4 = arith.cmpi slt, %0, %3 : vector<8x128xi32>
    %5 = arith.andi %2, %4 : vector<8x128xi1>
    %c0 = arith.constant 0 : index
    %c0_0 = arith.constant 0 : index
    %6 = vector.load %arg0[%c0, %c0_0] : memref<64x16xbf16, #tpu.memory_space<vmem>>, vector<64x16xbf16>
    %c0_1 = arith.constant 0 : index
    %c0_2 = arith.constant 0 : index
    %7 = vector.load %arg1[%c0_1, %c0_2] : memref<16x128xbf16, #tpu.memory_space<vmem>>, vector<16x128xbf16>
    %cst = arith.constant dense<0.000000e+00> : vector<64x128xf32>
    %8 = tpu.matmul %6, %7, %cst {dimension_numbers = #tpu.dot_dimension_numbers<[1], [0], [0], [1], [0, 0, 1, 1], [], []>} : vector<64x16xbf16>, vector<16x128xbf16>, vector<64x128xf32> -> vector<64x128xf32>
    %c0_3 = arith.constant 0 : index
    %c0_4 = arith.constant 0 : index
    %9 = vector.load %arg3[%c0_3, %c0_4] : memref<1x128xf32, #tpu.memory_space<vmem>>, vector<1x128xf32>
    %10 = vector.broadcast %9 : vector<1x128xf32> to vector<64x128xf32>
    %11 = arith.addf %8, %10 : vector<64x128xf32>
    %c0_5 = arith.constant 0 : index
    %c0_6 = arith.constant 0 : index
    %12 = vector.load %arg14[%c0_5, %c0_6] : memref<64x128xf32, #tpu.memory_space<vmem>>, vector<64x128xf32>
    tpu.vector_store %arg14[%c0_5, %c0_6], %11 {strides = array<i32>} : memref<64x128xf32, #tpu.memory_space<vmem>>, vector<64x128xf32>,
    %c0_7 = arith.constant 0 : index
    %c0_8 = arith.constant 0 : index
    %13 = vector.load %arg2[%c0_7, %c0_8] : memref<128x128xbf16, #tpu.memory_space<vmem>>, vector<128x128xbf16>
    %c0_9 = arith.constant 0 : index
    %c0_10 = arith.constant 0 : index
    %14 = vector.load %arg4[%c0_9, %c0_10] : memref<128x128xbf16, #tpu.memory_space<vmem>>, vector<128x128xbf16>
    %c0_11 = arith.constant 0 : index
    %c0_12 = arith.constant 0 : index
    %15 = vector.load %arg5[%c0_11, %c0_12] : memref<128x128xbf16, #tpu.memory_space<vmem>>, vector<128x128xbf16>
    %c0_13 = arith.constant 0 : index
    %c0_14 = arith.constant 0 : index
    %16 = vector.load %arg6[%c0_13, %c0_14] : memref<1x128xf32, #tpu.memory_space<vmem>>, vector<1x128xf32>
    %17 = vector.shape_cast %16 : vector<1x128xf32> to vector<1x128xf32>
    %18 = vector.broadcast %17 : vector<1x128xf32> to vector<8x128xf32>
    %cst_15 = arith.constant 0.000000e+00 : f32
    %19 = vector.broadcast %cst_15 : f32 to vector<8x128xf32>
    %c0_16 = arith.constant 0 : index
    %c0_17 = arith.constant 0 : index
    %20 = vector.load %arg14[%c0_16, %c0_17] : memref<64x128xf32, #tpu.memory_space<vmem>>, vector<8x128xf32>
    %21 = arith.negf %20 : vector<8x128xf32>
    %22 = math.exp %21 : vector<8x128xf32>
    %cst_18 = arith.constant 1.000000e+00 : f32
    %23 = vector.broadcast %cst_18 : f32 to vector<8x128xf32>
    %24 = arith.addf %23, %22 : vector<8x128xf32>
    %25 = arith.divf %23, %24 : vector<8x128xf32>
    %cst_19 = arith.constant 2.000000e+00 : f32
    %26 = vector.broadcast %cst_19 : f32 to vector<8x128xf32>
    %27 = arith.mulf %26, %25 : vector<8x128xf32>
    %cst_20 = arith.constant 1.000000e+00 : f32
    %28 = vector.broadcast %cst_20 : f32 to vector<8x128xf32>
    %29 = arith.subf %27, %28 : vector<8x128xf32>
    %30 = arith.select %5, %29, %25 : vector<8x128xi1>, vector<8x128xf32>
    %c32_i32 = arith.constant 32 : i32
    %31 = tpu.dynamic_rotate %30 by %c32_i32 dim 1 : vector<8x128xf32>, i32 -> vector<8x128xf32>
    %c64_i32_21 = arith.constant 64 : i32
    %32 = tpu.dynamic_rotate %30 by %c64_i32_21 dim 1 : vector<8x128xf32>, i32 -> vector<8x128xf32>
    %c96_i32_22 = arith.constant 96 : i32
    %33 = tpu.dynamic_rotate %30 by %c96_i32_22 dim 1 : vector<8x128xf32>, i32 -> vector<8x128xf32>
    %34 = arith.mulf %32, %19 : vector<8x128xf32>
    %35 = arith.mulf %31, %33 : vector<8x128xf32>
    %36 = arith.addf %34, %35 : vector<8x128xf32>
    %37 = math.tanh %36 : vector<8x128xf32>
    %38 = arith.mulf %30, %37 : vector<8x128xf32>
    %39 = arith.truncf %38 : vector<8x128xf32> to vector<8x128xbf16>
    %cst_23 = arith.constant 0.000000e+00 : bf16
    %40 = vector.broadcast %cst_23 : bf16 to vector<8x128xbf16>
    %c1_i32 = arith.constant 1 : i32
    %cst_24 = arith.constant dense<0.000000e+00> : vector<8x128xf32>
    %41 = tpu.matmul %39, %14, %cst_24 {dimension_numbers = #tpu.dot_dimension_numbers<[1], [0], [0], [1], [0, 0, 1, 1], [], []>} : vector<8x128xbf16>, vector<128x128xbf16>, vector<8x128xf32> -> vector<8x128xf32>
    %42 = arith.addf %41, %18 : vector<8x128xf32>
    %cst_25 = arith.constant dense<0.000000e+00> : vector<8x128xf32>
    %43 = tpu.matmul %40, %15, %cst_25 {dimension_numbers = #tpu.dot_dimension_numbers<[1], [0], [0], [1], [0, 0, 1, 1], [], []>} : vector<8x128xbf16>, vector<128x128xbf16>, vector<8x128xf32> -> vector<8x128xf32>
    %44 = arith.addf %42, %43 : vector<8x128xf32>
    %45 = arith.negf %44 : vector<8x128xf32>
    %46 = math.exp %45 : vector<8x128xf32>
    %cst_26 = arith.constant 1.000000e+00 : f32
    %47 = vector.broadcast %cst_26 : f32 to vector<8x128xf32>
    %48 = arith.addf %47, %46 : vector<8x128xf32>
    %49 = arith.divf %47, %48 : vector<8x128xf32>
    %cst_27 = arith.constant 2.000000e+00 : f32
    %50 = vector.broadcast %cst_27 : f32 to vector<8x128xf32>
    %51 = arith.mulf %50, %49 : vector<8x128xf32>
    %cst_28 = arith.constant 1.000000e+00 : f32
    %52 = vector.broadcast %cst_28 : f32 to vector<8x128xf32>
    %53 = arith.subf %51, %52 : vector<8x128xf32>
    %54 = arith.select %5, %53, %49 : vector<8x128xi1>, vector<8x128xf32>
    %c32_i32_29 = arith.constant 32 : i32
    %55 = tpu.dynamic_rotate %54 by %c32_i32_29 dim 1 : vector<8x128xf32>, i32 -> vector<8x128xf32>
    %c64_i32_30 = arith.constant 64 : i32
    %56 = tpu.dynamic_rotate %54 by %c64_i32_30 dim 1 : vector<8x128xf32>, i32 -> vector<8x128xf32>
    %c96_i32_31 = arith.constant 96 : i32
    %57 = tpu.dynamic_rotate %54 by %c96_i32_31 dim 1 : vector<8x128xf32>, i32 -> vector<8x128xf32>
    %58 = arith.mulf %56, %19 : vector<8x128xf32>
    %59 = arith.mulf %55, %57 : vector<8x128xf32>
    %60 = arith.addf %58, %59 : vector<8x128xf32>
    %61 = math.tanh %60 : vector<8x128xf32>
    %62 = arith.mulf %54, %61 : vector<8x128xf32>
    %c8_i32 = arith.constant 8 : i32
    %63 = arith.muli %c1_i32, %c8_i32 : i32
    %64 = tpu.assume_multiple %63, 8 : i32
    %65 = arith.index_cast %64 : i32 to index
    %c0_32 = arith.constant 0 : index
    %66 = vector.load %arg14[%65, %c0_32] : memref<64x128xf32, #tpu.memory_space<vmem>>, vector<8x128xf32>
    %cst_33 = arith.constant dense<0.000000e+00> : vector<8x128xf32>
    %67 = tpu.matmul %39, %13, %cst_33 {dimension_numbers = #tpu.dot_dimension_numbers<[1], [0], [0], [1], [0, 0, 1, 1], [], []>} : vector<8x128xbf16>, vector<128x128xbf16>, vector<8x128xf32> -> vector<8x128xf32>
    %68 = arith.addf %66, %67 : vector<8x128xf32>
    %69 = arith.negf %68 : vector<8x128xf32>
    %70 = math.exp %69 : vector<8x128xf32>
    %cst_34 = arith.constant 1.000000e+00 : f32
    %71 = vector.broadcast %cst_34 : f32 to vector<8x128xf32>
    %72 = arith.addf %71, %70 : vector<8x128xf32>
    %73 = arith.divf %71, %72 : vector<8x128xf32>
    %cst_35 = arith.constant 2.000000e+00 : f32
    %74 = vector.broadcast %cst_35 : f32 to vector<8x128xf32>
    %75 = arith.mulf %74, %73 : vector<8x128xf32>
    %cst_36 = arith.constant 1.000000e+00 : f32
    %76 = vector.broadcast %cst_36 : f32 to vector<8x128xf32>
    %77 = arith.subf %75, %76 : vector<8x128xf32>
    %78 = arith.select %5, %77, %73 : vector<8x128xi1>, vector<8x128xf32>
    %c32_i32_37 = arith.constant 32 : i32
    %79 = tpu.dynamic_rotate %78 by %c32_i32_37 dim 1 : vector<8x128xf32>, i32 -> vector<8x128xf32>
    %c64_i32_38 = arith.constant 64 : i32
    %80 = tpu.dynamic_rotate %78 by %c64_i32_38 dim 1 : vector<8x128xf32>, i32 -> vector<8x128xf32>
    %c96_i32_39 = arith.constant 96 : i32
    %81 = tpu.dynamic_rotate %78 by %c96_i32_39 dim 1 : vector<8x128xf32>, i32 -> vector<8x128xf32>
    %82 = arith.mulf %80, %36 : vector<8x128xf32>
    %83 = arith.mulf %79, %81 : vector<8x128xf32>
    %84 = arith.addf %82, %83 : vector<8x128xf32>
    %85 = math.tanh %84 : vector<8x128xf32>
    %86 = arith.mulf %78, %85 : vector<8x128xf32>
    %87 = arith.truncf %86 : vector<8x128xf32> to vector<8x128xbf16>
    %88 = arith.truncf %62 : vector<8x128xf32> to vector<8x128xbf16>
    %c2_i32 = arith.constant 2 : i32
    %cst_40 = arith.constant dense<0.000000e+00> : vector<8x128xf32>
    %89 = tpu.matmul %87, %14, %cst_40 {dimension_numbers = #tpu.dot_dimension_numbers<[1], [0], [0], [1], [0, 0, 1, 1], [], []>} : vector<8x128xbf16>, vector<128x128xbf16>, vector<8x128xf32> -> vector<8x128xf32>
    %90 = arith.addf %89, %18 : vector<8x128xf32>
    %cst_41 = arith.constant dense<0.000000e+00> : vector<8x128xf32>
    %91 = tpu.matmul %88, %15, %cst_41 {dimension_numbers = #tpu.dot_dimension_numbers<[1], [0], [0], [1], [0, 0, 1, 1], [], []>} : vector<8x128xbf16>, vector<128x128xbf16>, vector<8x128xf32> -> vector<8x128xf32>
    %92 = arith.addf %90, %91 : vector<8x128xf32>
    %93 = arith.negf %92 : vector<8x128xf32>
    %94 = math.exp %93 : vector<8x128xf32>
    %cst_42 = arith.constant 1.000000e+00 : f32
    %95 = vector.broadcast %cst_42 : f32 to vector<8x128xf32>
    %96 = arith.addf %95, %94 : vector<8x128xf32>
    %97 = arith.divf %95, %96 : vector<8x128xf32>
    %cst_43 = arith.constant 2.000000e+00 : f32
    %98 = vector.broadcast %cst_43 : f32 to vector<8x128xf32>
    %99 = arith.mulf %98, %97 : vector<8x128xf32>
    %cst_44 = arith.constant 1.000000e+00 : f32
    %100 = vector.broadcast %cst_44 : f32 to vector<8x128xf32>
    %101 = arith.subf %99, %100 : vector<8x128xf32>
    %102 = arith.select %5, %101, %97 : vector<8x128xi1>, vector<8x128xf32>
    %c32_i32_45 = arith.constant 32 : i32
    %103 = tpu.dynamic_rotate %102 by %c32_i32_45 dim 1 : vector<8x128xf32>, i32 -> vector<8x128xf32>
    %c64_i32_46 = arith.constant 64 : i32
    %104 = tpu.dynamic_rotate %102 by %c64_i32_46 dim 1 : vector<8x128xf32>, i32 -> vector<8x128xf32>
    %c96_i32_47 = arith.constant 96 : i32
    %105 = tpu.dynamic_rotate %102 by %c96_i32_47 dim 1 : vector<8x128xf32>, i32 -> vector<8x128xf32>
    %106 = arith.mulf %104, %60 : vector<8x128xf32>
    %107 = arith.mulf %103, %105 : vector<8x128xf32>
    %108 = arith.addf %106, %107 : vector<8x128xf32>
    %109 = math.tanh %108 : vector<8x128xf32>
    %110 = arith.mulf %102, %109 : vector<8x128xf32>
    %c8_i32_48 = arith.constant 8 : i32
    %111 = arith.muli %c2_i32, %c8_i32_48 : i32
    %112 = tpu.assume_multiple %111, 8 : i32
    %113 = arith.index_cast %112 : i32 to index
    %c0_49 = arith.constant 0 : index
    %114 = vector.load %arg14[%113, %c0_49] : memref<64x128xf32, #tpu.memory_space<vmem>>, vector<8x128xf32>
    %cst_50 = arith.constant dense<0.000000e+00> : vector<8x128xf32>
    %115 = tpu.matmul %87, %13, %cst_50 {dimension_numbers = #tpu.dot_dimension_numbers<[1], [0], [0], [1], [0, 0, 1, 1], [], []>} : vector<8x128xbf16>, vector<128x128xbf16>, vector<8x128xf32> -> vector<8x128xf32>
    %116 = arith.addf %114, %115 : vector<8x128xf32>
    %117 = arith.negf %116 : vector<8x128xf32>
    %118 = math.exp %117 : vector<8x128xf32>
    %cst_51 = arith.constant 1.000000e+00 : f32
    %119 = vector.broadcast %cst_51 : f32 to vector<8x128xf32>
    %120 = arith.addf %119, %118 : vector<8x128xf32>
    %121 = arith.divf %119, %120 : vector<8x128xf32>
    %cst_52 = arith.constant 2.000000e+00 : f32
    %122 = vector.broadcast %cst_52 : f32 to vector<8x128xf32>
    %123 = arith.mulf %122, %121 : vector<8x128xf32>
    %cst_53 = arith.constant 1.000000e+00 : f32
    %124 = vector.broadcast %cst_53 : f32 to vector<8x128xf32>
    %125 = arith.subf %123, %124 : vector<8x128xf32>
    %126 = arith.select %5, %125, %121 : vector<8x128xi1>, vector<8x128xf32>
    %c32_i32_54 = arith.constant 32 : i32
    %127 = tpu.dynamic_rotate %126 by %c32_i32_54 dim 1 : vector<8x128xf32>, i32 -> vector<8x128xf32>
    %c64_i32_55 = arith.constant 64 : i32
    %128 = tpu.dynamic_rotate %126 by %c64_i32_55 dim 1 : vector<8x128xf32>, i32 -> vector<8x128xf32>
    %c96_i32_56 = arith.constant 96 : i32
    %129 = tpu.dynamic_rotate %126 by %c96_i32_56 dim 1 : vector<8x128xf32>, i32 -> vector<8x128xf32>
    %130 = arith.mulf %128, %84 : vector<8x128xf32>
    %131 = arith.mulf %127, %129 : vector<8x128xf32>
    %132 = arith.addf %130, %131 : vector<8x128xf32>
    %133 = math.tanh %132 : vector<8x128xf32>
    %134 = arith.mulf %126, %133 : vector<8x128xf32>
    %135 = arith.truncf %134 : vector<8x128xf32> to vector<8x128xbf16>
    %136 = arith.truncf %110 : vector<8x128xf32> to vector<8x128xbf16>
    %c3_i32 = arith.constant 3 : i32
    %cst_57 = arith.constant dense<0.000000e+00> : vector<8x128xf32>
    %137 = tpu.matmul %135, %14, %cst_57 {dimension_numbers = #tpu.dot_dimension_numbers<[1], [0], [0], [1], [0, 0, 1, 1], [], []>} : vector<8x128xbf16>, vector<128x128xbf16>, vector<8x128xf32> -> vector<8x128xf32>
    %138 = arith.addf %137, %18 : vector<8x128xf32>
    %cst_58 = arith.constant dense<0.000000e+00> : vector<8x128xf32>
    %139 = tpu.matmul %136, %15, %cst_58 {dimension_numbers = #tpu.dot_dimension_numbers<[1], [0], [0], [1], [0, 0, 1, 1], [], []>} : vector<8x128xbf16>, vector<128x128xbf16>, vector<8x128xf32> -> vector<8x128xf32>
    %140 = arith.addf %138, %139 : vector<8x128xf32>
    %141 = arith.negf %140 : vector<8x128xf32>
    %142 = math.exp %141 : vector<8x128xf32>
    %cst_59 = arith.constant 1.000000e+00 : f32
    %143 = vector.broadcast %cst_59 : f32 to vector<8x128xf32>
    %144 = arith.addf %143, %142 : vector<8x128xf32>
    %145 = arith.divf %143, %144 : vector<8x128xf32>
    %cst_60 = arith.constant 2.000000e+00 : f32
    %146 = vector.broadcast %cst_60 : f32 to vector<8x128xf32>
    %147 = arith.mulf %146, %145 : vector<8x128xf32>
    %cst_61 = arith.constant 1.000000e+00 : f32
    %148 = vector.broadcast %cst_61 : f32 to vector<8x128xf32>
    %149 = arith.subf %147, %148 : vector<8x128xf32>
    %150 = arith.select %5, %149, %145 : vector<8x128xi1>, vector<8x128xf32>
    %c32_i32_62 = arith.constant 32 : i32
    %151 = tpu.dynamic_rotate %150 by %c32_i32_62 dim 1 : vector<8x128xf32>, i32 -> vector<8x128xf32>
    %c64_i32_63 = arith.constant 64 : i32
    %152 = tpu.dynamic_rotate %150 by %c64_i32_63 dim 1 : vector<8x128xf32>, i32 -> vector<8x128xf32>
    %c96_i32_64 = arith.constant 96 : i32
    %153 = tpu.dynamic_rotate %150 by %c96_i32_64 dim 1 : vector<8x128xf32>, i32 -> vector<8x128xf32>
    %154 = arith.mulf %152, %108 : vector<8x128xf32>
    %155 = arith.mulf %151, %153 : vector<8x128xf32>
    %156 = arith.addf %154, %155 : vector<8x128xf32>
    %157 = math.tanh %156 : vector<8x128xf32>
    %158 = arith.mulf %150, %157 : vector<8x128xf32>
    %c8_i32_65 = arith.constant 8 : i32
    %159 = arith.muli %c3_i32, %c8_i32_65 : i32
    %160 = tpu.assume_multiple %159, 8 : i32
    %161 = arith.index_cast %160 : i32 to index
    %c0_66 = arith.constant 0 : index
    %162 = vector.load %arg14[%161, %c0_66] : memref<64x128xf32, #tpu.memory_space<vmem>>, vector<8x128xf32>
    %cst_67 = arith.constant dense<0.000000e+00> : vector<8x128xf32>
    %163 = tpu.matmul %135, %13, %cst_67 {dimension_numbers = #tpu.dot_dimension_numbers<[1], [0], [0], [1], [0, 0, 1, 1], [], []>} : vector<8x128xbf16>, vector<128x128xbf16>, vector<8x128xf32> -> vector<8x128xf32>
    %164 = arith.addf %162, %163 : vector<8x128xf32>
    %165 = arith.negf %164 : vector<8x128xf32>
    %166 = math.exp %165 : vector<8x128xf32>
    %cst_68 = arith.constant 1.000000e+00 : f32
    %167 = vector.broadcast %cst_68 : f32 to vector<8x128xf32>
    %168 = arith.addf %167, %166 : vector<8x128xf32>
    %169 = arith.divf %167, %168 : vector<8x128xf32>
    %cst_69 = arith.constant 2.000000e+00 : f32
    %170 = vector.broadcast %cst_69 : f32 to vector<8x128xf32>
    %171 = arith.mulf %170, %169 : vector<8x128xf32>
    %cst_70 = arith.constant 1.000000e+00 : f32
    %172 = vector.broadcast %cst_70 : f32 to vector<8x128xf32>
    %173 = arith.subf %171, %172 : vector<8x128xf32>
    %174 = arith.select %5, %173, %169 : vector<8x128xi1>, vector<8x128xf32>
    %c32_i32_71 = arith.constant 32 : i32
    %175 = tpu.dynamic_rotate %174 by %c32_i32_71 dim 1 : vector<8x128xf32>, i32 -> vector<8x128xf32>
    %c64_i32_72 = arith.constant 64 : i32
    %176 = tpu.dynamic_rotate %174 by %c64_i32_72 dim 1 : vector<8x128xf32>, i32 -> vector<8x128xf32>
    %c96_i32_73 = arith.constant 96 : i32
    %177 = tpu.dynamic_rotate %174 by %c96_i32_73 dim 1 : vector<8x128xf32>, i32 -> vector<8x128xf32>
    %178 = arith.mulf %176, %132 : vector<8x128xf32>
    %179 = arith.mulf %175, %177 : vector<8x128xf32>
    %180 = arith.addf %178, %179 : vector<8x128xf32>
    %181 = math.tanh %180 : vector<8x128xf32>
    %182 = arith.mulf %174, %181 : vector<8x128xf32>
    %183 = arith.truncf %182 : vector<8x128xf32> to vector<8x128xbf16>
    %184 = arith.truncf %158 : vector<8x128xf32> to vector<8x128xbf16>
    %c4_i32 = arith.constant 4 : i32
    %cst_74 = arith.constant dense<0.000000e+00> : vector<8x128xf32>
    %185 = tpu.matmul %183, %14, %cst_74 {dimension_numbers = #tpu.dot_dimension_numbers<[1], [0], [0], [1], [0, 0, 1, 1], [], []>} : vector<8x128xbf16>, vector<128x128xbf16>, vector<8x128xf32> -> vector<8x128xf32>
    %186 = arith.addf %185, %18 : vector<8x128xf32>
    %cst_75 = arith.constant dense<0.000000e+00> : vector<8x128xf32>
    %187 = tpu.matmul %184, %15, %cst_75 {dimension_numbers = #tpu.dot_dimension_numbers<[1], [0], [0], [1], [0, 0, 1, 1], [], []>} : vector<8x128xbf16>, vector<128x128xbf16>, vector<8x128xf32> -> vector<8x128xf32>
    %188 = arith.addf %186, %187 : vector<8x128xf32>
    %189 = arith.negf %188 : vector<8x128xf32>
    %190 = math.exp %189 : vector<8x128xf32>
    %cst_76 = arith.constant 1.000000e+00 : f32
    %191 = vector.broadcast %cst_76 : f32 to vector<8x128xf32>
    %192 = arith.addf %191, %190 : vector<8x128xf32>
    %193 = arith.divf %191, %192 : vector<8x128xf32>
    %cst_77 = arith.constant 2.000000e+00 : f32
    %194 = vector.broadcast %cst_77 : f32 to vector<8x128xf32>
    %195 = arith.mulf %194, %193 : vector<8x128xf32>
    %cst_78 = arith.constant 1.000000e+00 : f32
    %196 = vector.broadcast %cst_78 : f32 to vector<8x128xf32>
    %197 = arith.subf %195, %196 : vector<8x128xf32>
    %198 = arith.select %5, %197, %193 : vector<8x128xi1>, vector<8x128xf32>
    %c32_i32_79 = arith.constant 32 : i32
    %199 = tpu.dynamic_rotate %198 by %c32_i32_79 dim 1 : vector<8x128xf32>, i32 -> vector<8x128xf32>
    %c64_i32_80 = arith.constant 64 : i32
    %200 = tpu.dynamic_rotate %198 by %c64_i32_80 dim 1 : vector<8x128xf32>, i32 -> vector<8x128xf32>
    %c96_i32_81 = arith.constant 96 : i32
    %201 = tpu.dynamic_rotate %198 by %c96_i32_81 dim 1 : vector<8x128xf32>, i32 -> vector<8x128xf32>
    %202 = arith.mulf %200, %156 : vector<8x128xf32>
    %203 = arith.mulf %199, %201 : vector<8x128xf32>
    %204 = arith.addf %202, %203 : vector<8x128xf32>
    %205 = math.tanh %204 : vector<8x128xf32>
    %206 = arith.mulf %198, %205 : vector<8x128xf32>
    %c8_i32_82 = arith.constant 8 : i32
    %207 = arith.muli %c4_i32, %c8_i32_82 : i32
    %208 = tpu.assume_multiple %207, 8 : i32
    %209 = arith.index_cast %208 : i32 to index
    %c0_83 = arith.constant 0 : index
    %210 = vector.load %arg14[%209, %c0_83] : memref<64x128xf32, #tpu.memory_space<vmem>>, vector<8x128xf32>
    %cst_84 = arith.constant dense<0.000000e+00> : vector<8x128xf32>
    %211 = tpu.matmul %183, %13, %cst_84 {dimension_numbers = #tpu.dot_dimension_numbers<[1], [0], [0], [1], [0, 0, 1, 1], [], []>} : vector<8x128xbf16>, vector<128x128xbf16>, vector<8x128xf32> -> vector<8x128xf32>
    %212 = arith.addf %210, %211 : vector<8x128xf32>
    %213 = arith.negf %212 : vector<8x128xf32>
    %214 = math.exp %213 : vector<8x128xf32>
    %cst_85 = arith.constant 1.000000e+00 : f32
    %215 = vector.broadcast %cst_85 : f32 to vector<8x128xf32>
    %216 = arith.addf %215, %214 : vector<8x128xf32>
    %217 = arith.divf %215, %216 : vector<8x128xf32>
    %cst_86 = arith.constant 2.000000e+00 : f32
    %218 = vector.broadcast %cst_86 : f32 to vector<8x128xf32>
    %219 = arith.mulf %218, %217 : vector<8x128xf32>
    %cst_87 = arith.constant 1.000000e+00 : f32
    %220 = vector.broadcast %cst_87 : f32 to vector<8x128xf32>
    %221 = arith.subf %219, %220 : vector<8x128xf32>
    %222 = arith.select %5, %221, %217 : vector<8x128xi1>, vector<8x128xf32>
    %c32_i32_88 = arith.constant 32 : i32
    %223 = tpu.dynamic_rotate %222 by %c32_i32_88 dim 1 : vector<8x128xf32>, i32 -> vector<8x128xf32>
    %c64_i32_89 = arith.constant 64 : i32
    %224 = tpu.dynamic_rotate %222 by %c64_i32_89 dim 1 : vector<8x128xf32>, i32 -> vector<8x128xf32>
    %c96_i32_90 = arith.constant 96 : i32
    %225 = tpu.dynamic_rotate %222 by %c96_i32_90 dim 1 : vector<8x128xf32>, i32 -> vector<8x128xf32>
    %226 = arith.mulf %224, %180 : vector<8x128xf32>
    %227 = arith.mulf %223, %225 : vector<8x128xf32>
    %228 = arith.addf %226, %227 : vector<8x128xf32>
    %229 = math.tanh %228 : vector<8x128xf32>
    %230 = arith.mulf %222, %229 : vector<8x128xf32>
    %231 = arith.truncf %230 : vector<8x128xf32> to vector<8x128xbf16>
    %232 = arith.truncf %206 : vector<8x128xf32> to vector<8x128xbf16>
    %c5_i32 = arith.constant 5 : i32
    %cst_91 = arith.constant dense<0.000000e+00> : vector<8x128xf32>
    %233 = tpu.matmul %231, %14, %cst_91 {dimension_numbers = #tpu.dot_dimension_numbers<[1], [0], [0], [1], [0, 0, 1, 1], [], []>} : vector<8x128xbf16>, vector<128x128xbf16>, vector<8x128xf32> -> vector<8x128xf32>
    %234 = arith.addf %233, %18 : vector<8x128xf32>
    %cst_92 = arith.constant dense<0.000000e+00> : vector<8x128xf32>
    %235 = tpu.matmul %232, %15, %cst_92 {dimension_numbers = #tpu.dot_dimension_numbers<[1], [0], [0], [1], [0, 0, 1, 1], [], []>} : vector<8x128xbf16>, vector<128x128xbf16>, vector<8x128xf32> -> vector<8x128xf32>
    %236 = arith.addf %234, %235 : vector<8x128xf32>
    %237 = arith.negf %236 : vector<8x128xf32>
    %238 = math.exp %237 : vector<8x128xf32>
    %cst_93 = arith.constant 1.000000e+00 : f32
    %239 = vector.broadcast %cst_93 : f32 to vector<8x128xf32>
    %240 = arith.addf %239, %238 : vector<8x128xf32>
    %241 = arith.divf %239, %240 : vector<8x128xf32>
    %cst_94 = arith.constant 2.000000e+00 : f32
    %242 = vector.broadcast %cst_94 : f32 to vector<8x128xf32>
    %243 = arith.mulf %242, %241 : vector<8x128xf32>
    %cst_95 = arith.constant 1.000000e+00 : f32
    %244 = vector.broadcast %cst_95 : f32 to vector<8x128xf32>
    %245 = arith.subf %243, %244 : vector<8x128xf32>
    %246 = arith.select %5, %245, %241 : vector<8x128xi1>, vector<8x128xf32>
    %c32_i32_96 = arith.constant 32 : i32
    %247 = tpu.dynamic_rotate %246 by %c32_i32_96 dim 1 : vector<8x128xf32>, i32 -> vector<8x128xf32>
    %c64_i32_97 = arith.constant 64 : i32
    %248 = tpu.dynamic_rotate %246 by %c64_i32_97 dim 1 : vector<8x128xf32>, i32 -> vector<8x128xf32>
    %c96_i32_98 = arith.constant 96 : i32
    %249 = tpu.dynamic_rotate %246 by %c96_i32_98 dim 1 : vector<8x128xf32>, i32 -> vector<8x128xf32>
    %250 = arith.mulf %248, %204 : vector<8x128xf32>
    %251 = arith.mulf %247, %249 : vector<8x128xf32>
    %252 = arith.addf %250, %251 : vector<8x128xf32>
    %253 = math.tanh %252 : vector<8x128xf32>
    %254 = arith.mulf %246, %253 : vector<8x128xf32>
    %c8_i32_99 = arith.constant 8 : i32
    %255 = arith.muli %c5_i32, %c8_i32_99 : i32
    %256 = tpu.assume_multiple %255, 8 : i32
    %257 = arith.index_cast %256 : i32 to index
    %c0_100 = arith.constant 0 : index
    %258 = vector.load %arg14[%257, %c0_100] : memref<64x128xf32, #tpu.memory_space<vmem>>, vector<8x128xf32>
    %cst_101 = arith.constant dense<0.000000e+00> : vector<8x128xf32>
    %259 = tpu.matmul %231, %13, %cst_101 {dimension_numbers = #tpu.dot_dimension_numbers<[1], [0], [0], [1], [0, 0, 1, 1], [], []>} : vector<8x128xbf16>, vector<128x128xbf16>, vector<8x128xf32> -> vector<8x128xf32>
    %260 = arith.addf %258, %259 : vector<8x128xf32>
    %261 = arith.negf %260 : vector<8x128xf32>
    %262 = math.exp %261 : vector<8x128xf32>
    %cst_102 = arith.constant 1.000000e+00 : f32
    %263 = vector.broadcast %cst_102 : f32 to vector<8x128xf32>
    %264 = arith.addf %263, %262 : vector<8x128xf32>
    %265 = arith.divf %263, %264 : vector<8x128xf32>
    %cst_103 = arith.constant 2.000000e+00 : f32
    %266 = vector.broadcast %cst_103 : f32 to vector<8x128xf32>
    %267 = arith.mulf %266, %265 : vector<8x128xf32>
    %cst_104 = arith.constant 1.000000e+00 : f32
    %268 = vector.broadcast %cst_104 : f32 to vector<8x128xf32>
    %269 = arith.subf %267, %268 : vector<8x128xf32>
    %270 = arith.select %5, %269, %265 : vector<8x128xi1>, vector<8x128xf32>
    %c32_i32_105 = arith.constant 32 : i32
    %271 = tpu.dynamic_rotate %270 by %c32_i32_105 dim 1 : vector<8x128xf32>, i32 -> vector<8x128xf32>
    %c64_i32_106 = arith.constant 64 : i32
    %272 = tpu.dynamic_rotate %270 by %c64_i32_106 dim 1 : vector<8x128xf32>, i32 -> vector<8x128xf32>
    %c96_i32_107 = arith.constant 96 : i32
    %273 = tpu.dynamic_rotate %270 by %c96_i32_107 dim 1 : vector<8x128xf32>, i32 -> vector<8x128xf32>
    %274 = arith.mulf %272, %228 : vector<8x128xf32>
    %275 = arith.mulf %271, %273 : vector<8x128xf32>
    %276 = arith.addf %274, %275 : vector<8x128xf32>
    %277 = math.tanh %276 : vector<8x128xf32>
    %278 = arith.mulf %270, %277 : vector<8x128xf32>
    %279 = arith.truncf %278 : vector<8x128xf32> to vector<8x128xbf16>
    %280 = arith.truncf %254 : vector<8x128xf32> to vector<8x128xbf16>
    %c6_i32 = arith.constant 6 : i32
    %cst_108 = arith.constant dense<0.000000e+00> : vector<8x128xf32>
    %281 = tpu.matmul %279, %14, %cst_108 {dimension_numbers = #tpu.dot_dimension_numbers<[1], [0], [0], [1], [0, 0, 1, 1], [], []>} : vector<8x128xbf16>, vector<128x128xbf16>, vector<8x128xf32> -> vector<8x128xf32>
    %282 = arith.addf %281, %18 : vector<8x128xf32>
    %cst_109 = arith.constant dense<0.000000e+00> : vector<8x128xf32>
    %283 = tpu.matmul %280, %15, %cst_109 {dimension_numbers = #tpu.dot_dimension_numbers<[1], [0], [0], [1], [0, 0, 1, 1], [], []>} : vector<8x128xbf16>, vector<128x128xbf16>, vector<8x128xf32> -> vector<8x128xf32>
    %284 = arith.addf %282, %283 : vector<8x128xf32>
    %285 = arith.negf %284 : vector<8x128xf32>
    %286 = math.exp %285 : vector<8x128xf32>
    %cst_110 = arith.constant 1.000000e+00 : f32
    %287 = vector.broadcast %cst_110 : f32 to vector<8x128xf32>
    %288 = arith.addf %287, %286 : vector<8x128xf32>
    %289 = arith.divf %287, %288 : vector<8x128xf32>
    %cst_111 = arith.constant 2.000000e+00 : f32
    %290 = vector.broadcast %cst_111 : f32 to vector<8x128xf32>
    %291 = arith.mulf %290, %289 : vector<8x128xf32>
    %cst_112 = arith.constant 1.000000e+00 : f32
    %292 = vector.broadcast %cst_112 : f32 to vector<8x128xf32>
    %293 = arith.subf %291, %292 : vector<8x128xf32>
    %294 = arith.select %5, %293, %289 : vector<8x128xi1>, vector<8x128xf32>
    %c32_i32_113 = arith.constant 32 : i32
    %295 = tpu.dynamic_rotate %294 by %c32_i32_113 dim 1 : vector<8x128xf32>, i32 -> vector<8x128xf32>
    %c64_i32_114 = arith.constant 64 : i32
    %296 = tpu.dynamic_rotate %294 by %c64_i32_114 dim 1 : vector<8x128xf32>, i32 -> vector<8x128xf32>
    %c96_i32_115 = arith.constant 96 : i32
    %297 = tpu.dynamic_rotate %294 by %c96_i32_115 dim 1 : vector<8x128xf32>, i32 -> vector<8x128xf32>
    %298 = arith.mulf %296, %252 : vector<8x128xf32>
    %299 = arith.mulf %295, %297 : vector<8x128xf32>
    %300 = arith.addf %298, %299 : vector<8x128xf32>
    %301 = math.tanh %300 : vector<8x128xf32>
    %302 = arith.mulf %294, %301 : vector<8x128xf32>
    %c8_i32_116 = arith.constant 8 : i32
    %303 = arith.muli %c6_i32, %c8_i32_116 : i32
    %304 = tpu.assume_multiple %303, 8 : i32
    %305 = arith.index_cast %304 : i32 to index
    %c0_117 = arith.constant 0 : index
    %306 = vector.load %arg14[%305, %c0_117] : memref<64x128xf32, #tpu.memory_space<vmem>>, vector<8x128xf32>
    %cst_118 = arith.constant dense<0.000000e+00> : vector<8x128xf32>
    %307 = tpu.matmul %279, %13, %cst_118 {dimension_numbers = #tpu.dot_dimension_numbers<[1], [0], [0], [1], [0, 0, 1, 1], [], []>} : vector<8x128xbf16>, vector<128x128xbf16>, vector<8x128xf32> -> vector<8x128xf32>
    %308 = arith.addf %306, %307 : vector<8x128xf32>
    %309 = arith.negf %308 : vector<8x128xf32>
    %310 = math.exp %309 : vector<8x128xf32>
    %cst_119 = arith.constant 1.000000e+00 : f32
    %311 = vector.broadcast %cst_119 : f32 to vector<8x128xf32>
    %312 = arith.addf %311, %310 : vector<8x128xf32>
    %313 = arith.divf %311, %312 : vector<8x128xf32>
    %cst_120 = arith.constant 2.000000e+00 : f32
    %314 = vector.broadcast %cst_120 : f32 to vector<8x128xf32>
    %315 = arith.mulf %314, %313 : vector<8x128xf32>
    %cst_121 = arith.constant 1.000000e+00 : f32
    %316 = vector.broadcast %cst_121 : f32 to vector<8x128xf32>
    %317 = arith.subf %315, %316 : vector<8x128xf32>
    %318 = arith.select %5, %317, %313 : vector<8x128xi1>, vector<8x128xf32>
    %c32_i32_122 = arith.constant 32 : i32
    %319 = tpu.dynamic_rotate %318 by %c32_i32_122 dim 1 : vector<8x128xf32>, i32 -> vector<8x128xf32>
    %c64_i32_123 = arith.constant 64 : i32
    %320 = tpu.dynamic_rotate %318 by %c64_i32_123 dim 1 : vector<8x128xf32>, i32 -> vector<8x128xf32>
    %c96_i32_124 = arith.constant 96 : i32
    %321 = tpu.dynamic_rotate %318 by %c96_i32_124 dim 1 : vector<8x128xf32>, i32 -> vector<8x128xf32>
    %322 = arith.mulf %320, %276 : vector<8x128xf32>
    %323 = arith.mulf %319, %321 : vector<8x128xf32>
    %324 = arith.addf %322, %323 : vector<8x128xf32>
    %325 = math.tanh %324 : vector<8x128xf32>
    %326 = arith.mulf %318, %325 : vector<8x128xf32>
    %327 = arith.truncf %326 : vector<8x128xf32> to vector<8x128xbf16>
    %328 = arith.truncf %302 : vector<8x128xf32> to vector<8x128xbf16>
    %c7_i32 = arith.constant 7 : i32
    %cst_125 = arith.constant dense<0.000000e+00> : vector<8x128xf32>
    %329 = tpu.matmul %327, %14, %cst_125 {dimension_numbers = #tpu.dot_dimension_numbers<[1], [0], [0], [1], [0, 0, 1, 1], [], []>} : vector<8x128xbf16>, vector<128x128xbf16>, vector<8x128xf32> -> vector<8x128xf32>
    %330 = arith.addf %329, %18 : vector<8x128xf32>
    %cst_126 = arith.constant dense<0.000000e+00> : vector<8x128xf32>
    %331 = tpu.matmul %328, %15, %cst_126 {dimension_numbers = #tpu.dot_dimension_numbers<[1], [0], [0], [1], [0, 0, 1, 1], [], []>} : vector<8x128xbf16>, vector<128x128xbf16>, vector<8x128xf32> -> vector<8x128xf32>
    %332 = arith.addf %330, %331 : vector<8x128xf32>
    %333 = arith.negf %332 : vector<8x128xf32>
    %334 = math.exp %333 : vector<8x128xf32>
    %cst_127 = arith.constant 1.000000e+00 : f32
    %335 = vector.broadcast %cst_127 : f32 to vector<8x128xf32>
    %336 = arith.addf %335, %334 : vector<8x128xf32>
    %337 = arith.divf %335, %336 : vector<8x128xf32>
    %cst_128 = arith.constant 2.000000e+00 : f32
    %338 = vector.broadcast %cst_128 : f32 to vector<8x128xf32>
    %339 = arith.mulf %338, %337 : vector<8x128xf32>
    %cst_129 = arith.constant 1.000000e+00 : f32
    %340 = vector.broadcast %cst_129 : f32 to vector<8x128xf32>
    %341 = arith.subf %339, %340 : vector<8x128xf32>
    %342 = arith.select %5, %341, %337 : vector<8x128xi1>, vector<8x128xf32>
    %c32_i32_130 = arith.constant 32 : i32
    %343 = tpu.dynamic_rotate %342 by %c32_i32_130 dim 1 : vector<8x128xf32>, i32 -> vector<8x128xf32>
    %c64_i32_131 = arith.constant 64 : i32
    %344 = tpu.dynamic_rotate %342 by %c64_i32_131 dim 1 : vector<8x128xf32>, i32 -> vector<8x128xf32>
    %c96_i32_132 = arith.constant 96 : i32
    %345 = tpu.dynamic_rotate %342 by %c96_i32_132 dim 1 : vector<8x128xf32>, i32 -> vector<8x128xf32>
    %346 = arith.mulf %344, %300 : vector<8x128xf32>
    %347 = arith.mulf %343, %345 : vector<8x128xf32>
    %348 = arith.addf %346, %347 : vector<8x128xf32>
    %349 = math.tanh %348 : vector<8x128xf32>
    %350 = arith.mulf %342, %349 : vector<8x128xf32>
    %c8_i32_133 = arith.constant 8 : i32
    %351 = arith.muli %c7_i32, %c8_i32_133 : i32
    %352 = tpu.assume_multiple %351, 8 : i32
    %353 = arith.index_cast %352 : i32 to index
    %c0_134 = arith.constant 0 : index
    %354 = vector.load %arg14[%353, %c0_134] : memref<64x128xf32, #tpu.memory_space<vmem>>, vector<8x128xf32>
    %cst_135 = arith.constant dense<0.000000e+00> : vector<8x128xf32>
    %355 = tpu.matmul %327, %13, %cst_135 {dimension_numbers = #tpu.dot_dimension_numbers<[1], [0], [0], [1], [0, 0, 1, 1], [], []>} : vector<8x128xbf16>, vector<128x128xbf16>, vector<8x128xf32> -> vector<8x128xf32>
    %356 = arith.addf %354, %355 : vector<8x128xf32>
    %357 = arith.negf %356 : vector<8x128xf32>
    %358 = math.exp %357 : vector<8x128xf32>
    %cst_136 = arith.constant 1.000000e+00 : f32
    %359 = vector.broadcast %cst_136 : f32 to vector<8x128xf32>
    %360 = arith.addf %359, %358 : vector<8x128xf32>
    %361 = arith.divf %359, %360 : vector<8x128xf32>
    %cst_137 = arith.constant 2.000000e+00 : f32
    %362 = vector.broadcast %cst_137 : f32 to vector<8x128xf32>
    %363 = arith.mulf %362, %361 : vector<8x128xf32>
    %cst_138 = arith.constant 1.000000e+00 : f32
    %364 = vector.broadcast %cst_138 : f32 to vector<8x128xf32>
    %365 = arith.subf %363, %364 : vector<8x128xf32>
    %366 = arith.select %5, %365, %361 : vector<8x128xi1>, vector<8x128xf32>
    %c32_i32_139 = arith.constant 32 : i32
    %367 = tpu.dynamic_rotate %366 by %c32_i32_139 dim 1 : vector<8x128xf32>, i32 -> vector<8x128xf32>
    %c64_i32_140 = arith.constant 64 : i32
    %368 = tpu.dynamic_rotate %366 by %c64_i32_140 dim 1 : vector<8x128xf32>, i32 -> vector<8x128xf32>
    %c96_i32_141 = arith.constant 96 : i32
    %369 = tpu.dynamic_rotate %366 by %c96_i32_141 dim 1 : vector<8x128xf32>, i32 -> vector<8x128xf32>
    %370 = arith.mulf %368, %324 : vector<8x128xf32>
    %371 = arith.mulf %367, %369 : vector<8x128xf32>
    %372 = arith.addf %370, %371 : vector<8x128xf32>
    %373 = math.tanh %372 : vector<8x128xf32>
    %374 = arith.mulf %366, %373 : vector<8x128xf32>
    %375 = arith.truncf %374 : vector<8x128xf32> to vector<8x128xbf16>
    %376 = arith.truncf %350 : vector<8x128xf32> to vector<8x128xbf16>
    %c7_i32_142 = arith.constant 7 : i32
    %cst_143 = arith.constant dense<0.000000e+00> : vector<8x128xf32>
    %377 = tpu.matmul %375, %14, %cst_143 {dimension_numbers = #tpu.dot_dimension_numbers<[1], [0], [0], [1], [0, 0, 1, 1], [], []>} : vector<8x128xbf16>, vector<128x128xbf16>, vector<8x128xf32> -> vector<8x128xf32>
    %378 = arith.addf %377, %18 : vector<8x128xf32>
    %cst_144 = arith.constant dense<0.000000e+00> : vector<8x128xf32>
    %379 = tpu.matmul %376, %15, %cst_144 {dimension_numbers = #tpu.dot_dimension_numbers<[1], [0], [0], [1], [0, 0, 1, 1], [], []>} : vector<8x128xbf16>, vector<128x128xbf16>, vector<8x128xf32> -> vector<8x128xf32>
    %380 = arith.addf %378, %379 : vector<8x128xf32>
    %381 = arith.negf %380 : vector<8x128xf32>
    %382 = math.exp %381 : vector<8x128xf32>
    %cst_145 = arith.constant 1.000000e+00 : f32
    %383 = vector.broadcast %cst_145 : f32 to vector<8x128xf32>
    %384 = arith.addf %383, %382 : vector<8x128xf32>
    %385 = arith.divf %383, %384 : vector<8x128xf32>
    %cst_146 = arith.constant 2.000000e+00 : f32
    %386 = vector.broadcast %cst_146 : f32 to vector<8x128xf32>
    %387 = arith.mulf %386, %385 : vector<8x128xf32>
    %cst_147 = arith.constant 1.000000e+00 : f32
    %388 = vector.broadcast %cst_147 : f32 to vector<8x128xf32>
    %389 = arith.subf %387, %388 : vector<8x128xf32>
    %390 = arith.select %5, %389, %385 : vector<8x128xi1>, vector<8x128xf32>
    %c32_i32_148 = arith.constant 32 : i32
    %391 = tpu.dynamic_rotate %390 by %c32_i32_148 dim 1 : vector<8x128xf32>, i32 -> vector<8x128xf32>
    %c64_i32_149 = arith.constant 64 : i32
    %392 = tpu.dynamic_rotate %390 by %c64_i32_149 dim 1 : vector<8x128xf32>, i32 -> vector<8x128xf32>
    %c96_i32_150 = arith.constant 96 : i32
    %393 = tpu.dynamic_rotate %390 by %c96_i32_150 dim 1 : vector<8x128xf32>, i32 -> vector<8x128xf32>
    %394 = arith.mulf %392, %348 : vector<8x128xf32>
    %395 = arith.mulf %391, %393 : vector<8x128xf32>
    %396 = arith.addf %394, %395 : vector<8x128xf32>
    %397 = math.tanh %396 : vector<8x128xf32>
    %398 = arith.mulf %390, %397 : vector<8x128xf32>
    %c0_151 = arith.constant 0 : index
    %c0_152 = arith.constant 0 : index
    %399 = vector.load %arg7[%c0_151, %c0_152] : memref<128x16xf32, #tpu.memory_space<vmem>>, vector<128x16xf32>
    %cst_153 = arith.constant dense<0.000000e+00> : vector<8x16xf32>
    %400 = tpu.matmul %398, %399, %cst_153 {dimension_numbers = #tpu.dot_dimension_numbers<[1], [0], [0], [1], [0, 0, 1, 1], [], []>} : vector<8x128xf32>, vector<128x16xf32>, vector<8x16xf32> -> vector<8x16xf32>
    %c0_154 = arith.constant 0 : index
    %c0_155 = arith.constant 0 : index
    %401 = vector.load %arg8[%c0_154, %c0_155] : memref<1x16xf32, #tpu.memory_space<vmem>>, vector<1x16xf32>
    %402 = vector.broadcast %401 : vector<1x16xf32> to vector<8x16xf32>
    %403 = arith.addf %400, %402 : vector<8x16xf32>
    %cst_156 = arith.constant 0.000000e+00 : f32
    %404 = vector.broadcast %cst_156 : f32 to vector<8x16xf32>
    %405 = arith.maximumf %403, %404 : vector<8x16xf32>
    %c0_157 = arith.constant 0 : index
    %c0_158 = arith.constant 0 : index
    %406 = vector.load %arg9[%c0_157, %c0_158] : memref<16x8xf32, #tpu.memory_space<vmem>>, vector<16x8xf32>
    %cst_159 = arith.constant dense<0.000000e+00> : vector<8x8xf32>
    %407 = tpu.matmul %405, %406, %cst_159 {dimension_numbers = #tpu.dot_dimension_numbers<[1], [0], [0], [1], [0, 0, 1, 1], [], []>} : vector<8x16xf32>, vector<16x8xf32>, vector<8x8xf32> -> vector<8x8xf32>
    %c0_160 = arith.constant 0 : index
    %c0_161 = arith.constant 0 : index
    %408 = vector.load %arg10[%c0_160, %c0_161] : memref<1x8xf32, #tpu.memory_space<vmem>>, vector<1x8xf32>
    %409 = vector.broadcast %408 : vector<1x8xf32> to vector<8x8xf32>
    %410 = arith.addf %407, %409 : vector<8x8xf32>
    %cst_162 = arith.constant 0.000000e+00 : f32
    %411 = vector.broadcast %cst_162 : f32 to vector<8x8xf32>
    %412 = arith.maximumf %410, %411 : vector<8x8xf32>
    %c0_163 = arith.constant 0 : index
    %c0_164 = arith.constant 0 : index
    %413 = vector.load %arg11[%c0_163, %c0_164] : memref<1x8xf32, #tpu.memory_space<vmem>>, vector<1x8xf32>
    %414 = vector.broadcast %413 : vector<1x8xf32> to vector<8x8xf32>
    %415 = arith.mulf %412, %414 : vector<8x8xf32>
    %cst_165 = arith.constant dense<0.000000e+00> : vector<8xf32>
    %416 = vector.multi_reduction <add>, %415, %cst_165 [1] : vector<8x8xf32> to vector<8xf32>
    %417 = vector.shape_cast %416 : vector<8xf32> to vector<8x1xf32>
    %c0_166 = arith.constant 0 : index
    %c0_167 = arith.constant 0 : index
    %418 = vector.load %arg12[%c0_166, %c0_167] : memref<1x1xf32, #tpu.memory_space<vmem>>, vector<1x1xf32>
    %419 = vector.broadcast %418 : vector<1x1xf32> to vector<8x1xf32>
    %420 = arith.addf %417, %419 : vector<8x1xf32>
    %c0_168 = arith.constant 0 : index
    %c0_169 = arith.constant 0 : index
    %421 = vector.load %arg13[%c0_168, %c0_169] : memref<8x1xf32, #tpu.memory_space<vmem>>, vector<8x1xf32>
    tpu.vector_store %arg13[%c0_168, %c0_169], %420 {strides = array<i32>} : memref<8x1xf32, #tpu.memory_space<vmem>>, vector<8x1xf32>,
    return
  }
}

</mosaic_0001>

<bundles_post_ra>
// kernel: lstm_model_forward.1
= control target key start
LH: loop header
LB: loop body
LE: loop exit
PB: predicated region body
PF: predicated region fallthrough
CT: control target
= control target key end

     0   :  { %vm95_vm0 = vcmask 130048   ;;  %v2909_v3 = vmov 0.0   ;;  %v47_v18 = vlaneseq  ;;  %vm2910_vm4 = vmmov 0   ;;  %s2911_s28 = smov 96   ;;  %s2912_s29 = smov 32   ;;  %s3930_s1 = inlined_call_operand.vmem [shape: bf16[16,128], index: 1, kind: input, shape index: {}]   ;;  %s3931_s0 = inlined_call_operand.vmem [shape: bf16[64,16], index: 0, kind: input, shape index: {}]   ;;  %s3932_s4 = inlined_call_operand.vmem [shape: bf16[128,128], index: 4, kind: input, shape index: {}]   ;;  %s3933_s2 = inlined_call_operand.vmem [shape: bf16[128,128], index: 2, kind: input, shape index: {}]   ;;  %s3934_s3 = inlined_call_operand.vmem [shape: f32[1,128], index: 3, kind: input, shape index: {}]   ;;  %s3935_s5 = inlined_call_operand.vmem [shape: bf16[128,128], index: 5, kind: input, shape index: {}]   ;;  %s3936_s6 = inlined_call_operand.vmem [shape: f32[1,128], index: 6, kind: input, shape index: {}]   ;;  %s3937_s7 = inlined_call_operand.vmem [shape: f32[128,16], index: 7, kind: input, shape index: {}]   ;;  %s3938_s9 = inlined_call_operand.vmem [shape: f32[16,8], index: 9, kind: input, shape index: {}]   ;;  %s3939_s8 = inlined_call_operand.vmem [shape: f32[1,16], index: 8, kind: input, shape index: {}]   ;;  %s3940_s12 = inlined_call_operand.<no memory space> [shape: f32[1,1], index: 12, kind: input, shape index: {}]   ;;  %s3941_s10 = inlined_call_operand.vmem [shape: f32[1,8], index: 10, kind: input, shape index: {}]   ;;  %s3942_s11 = inlined_call_operand.vmem [shape: f32[1,8], index: 11, kind: input, shape index: {}]   ;;  %s3943_s13 = inlined_call_operand.vmem [shape: f32[8,1], index: 13, kind: output, shape index: {}]  }
   0x1   :  { %v2758_v0 = vld [vmem:[%s3930_s1] sm:$0xff]   ;;  %v2760_v2 = vld [vmem:[%s3931_s0 + $0x8] sm:$0xff]   ;;  %2182 = vmatprep.subr.bf16.mxu1 %v2909_v3  ;;  %v3026_v8 = vld [vmem:[%s3932_s4 + $0x10] sm:$0xff]   ;;  %2198 = vmatprep.mubr.msk.bf16.mxu1 %vm2910_vm4, %v2909_v3  ;;  %s2913_s16 = smov 64   ;;  %v2914_v55 = vmov 0   ;;  %vm1850_vm5 = vcmask 64512  }
   0x2   :  { %v2759_v1 = vld [vmem:[%s3931_s0] sm:$0xff]   ;;  %2172 = vmatprep.subr.bf16.mxu0 %v2758_v0  ;;  %v3013_v6 = vld [vmem:[%s3932_s4 + $0x8] sm:$0xff]   ;;  %v3049_v19 = vld [vmem:[%s3933_s2 + $0x10] sm:$0xff]   ;;  %v48_v21 = vand.u32 127, %v47_v18  ;;  %vm1862_vm6 = vcmask 7168  }
   0x3   :  { %2173 = vmatpush3.bf16.msra.mxu0 %v2758_v0  ;;  %2174 = vmatprep.mubr.msk.bf16.mxu0 %vm95_vm0, %v2759_v1  ;;  %v3001_v4 = vld [vmem:[%s3932_s4] sm:$0xff]   ;;  %v3020_v7 = vld [vmem:[%s3933_s2 + $0x8] sm:$0xff]   ;;  %v3055_v20 = vld [vmem:[%s3932_s4 + $0x18] sm:$0xff]  }
   0x4   :  { %2222 = vmatprep.subr.bf16.mxu0 %v2909_v3  ;;  %v3007_v5 = vld [vmem:[%s3933_s2] sm:$0xff]   ;;  %2183 = vmatpush3.bf16.msra.mxu1 %v3001_v4  ;;  %v3062_v22 = vld [vmem:[%s3933_s2 + $0x18] sm:$0xff]   ;;  %vm49_vm1 = vcmp.ge.s32.totalorder %v48_v21, 64  ;;  %vm50_vm2 = vcmp.lt.s32.totalorder %v48_v21, 96  ;;  %v2771_v27 = vld [vmem:[%s3931_s0 + $0x10] sm:$0xff]  }
   0x5   :  { %2184 = vmatprep.subr.bf16.mxu1 %v2909_v3  ;;  %v3037_v9 = vld [vmem:[%s3934_s3] ss:$0 sm:$0xff]  ;;  %v3086_v28 = vld [vmem:[%s3932_s4 + $0x28] sm:$0xff]   ;;  %v2773_v29 = vld [vmem:[%s3931_s0 + $0x18] sm:$0xff]  }
   0x6   :  { %2175 = vmatmul.mubr.msk.bf16.vlgmr.msra.gmra.mrb[0].mxu0 %vm95_vm0, %v2760_v2  ;;  %v3069_v23 = vld [vmem:[%s3932_s4 + $0x20] sm:$0xff]   ;;  %vm3091_vm3 = vmand %vm49_vm1, %vm50_vm2  ;;  %v3099_v31 = vld [vmem:[%s3933_s2 + $0x28] sm:$0xff]  }
   0x7   :  { %2223 = vmatpush3.bf16.msra.mxu0 %v3007_v5  ;;  %v3075_v24 = vld [vmem:[%s3933_s2 + $0x20] sm:$0xff]   ;;  %2178 = vmatprep.mubr.msk.bf16.mxu0 %vm95_vm0, %v2771_v27  ;;  %v3109_v33 = vld [vmem:[%s3932_s4 + $0x30] sm:$0xff]   ;;  %v3129_v36 = vld [vmem:[%s3932_s4 + $0x38] sm:$0xff]  }
   0x8   :  { %2224 = vmatprep.subr.bf16.mxu0 %v2909_v3  ;;  %2185 = vmatpush3.bf16.msra.mxu1 %v3013_v6  ;;  %v3118_v35 = vld [vmem:[%s3933_s2 + $0x30] sm:$0xff]   ;;  %v3136_v37 = vld [vmem:[%s3933_s2 + $0x38] sm:$0xff]   ;;  %v3150_v46 = vld [vmem:[%s3935_s5] sm:$0xff]  }
   0x9   :  { %2186 = vmatprep.subr.bf16.mxu1 %v2909_v3  ;;  %v3156_v48 = vld [vmem:[%s3935_s5 + $0x8] sm:$0xff]   ;;  %v3169_v49 = vld [vmem:[%s3935_s5 + $0x10] sm:$0xff]   ;;  %v3178_v50 = vld [vmem:[%s3935_s5 + $0x18] sm:$0xff]  }
   0xa   :  { %v3187_v51 = vld [vmem:[%s3935_s5 + $0x20] sm:$0xff]   ;;  %v3196_v52 = vld [vmem:[%s3935_s5 + $0x28] sm:$0xff]   ;;  %v3205_v53 = vld [vmem:[%s3935_s5 + $0x30] sm:$0xff]  }
   0xb   :  { %2225 = vmatpush3.bf16.msra.mxu0 %v3020_v7  ;;  %v3214_v54 = vld [vmem:[%s3935_s5 + $0x38] sm:$0xff]  }
   0xc   :  { %2226 = vmatprep.subr.bf16.mxu0 %v2909_v3  ;;  %2187 = vmatpush3.bf16.msra.mxu1 %v3026_v8 }
   0xd   :  { %2188 = vmatprep.subr.bf16.mxu1 %v2909_v3 }
   0xe   :  { %2179 = vmatmul.mubr.msk.bf16.gmra.mrb[4].mxu0 %vm95_vm0, %v2773_v29 }
   0xf   :  { %2227 = vmatpush3.bf16.msra.mxu0 %v3049_v19  ;;  %2238 = vmatprep.mubr.msk.bf16.mxu0 %vm2910_vm4, %v2909_v3 }
  0x10   :  { %2228 = vmatprep.subr.bf16.mxu0 %v2909_v3  ;;  %2189 = vmatpush3.bf16.msra.mxu1 %v3055_v20 }
  0x11   :  { %2190 = vmatprep.subr.bf16.mxu1 %v2909_v3 }
  0x13   :  { %2229 = vmatpush3.bf16.msra.mxu0 %v3062_v22 }
  0x14   :  { %2230 = vmatprep.subr.bf16.mxu0 %v2909_v3  ;;  %2191 = vmatpush3.bf16.msra.mxu1 %v3069_v23 }
  0x15   :  { %2192 = vmatprep.subr.bf16.mxu1 %v2909_v3 }
  0x17   :  { %2231 = vmatpush3.bf16.msra.mxu0 %v3075_v24 }
  0x18   :  { %2232 = vmatprep.subr.bf16.mxu0 %v2909_v3  ;;  %2193 = vmatpush3.bf16.msra.mxu1 %v3086_v28 }
  0x19   :  { %2194 = vmatprep.subr.bf16.mxu1 %v2909_v3 }
  0x1b   :  { %2233 = vmatpush3.bf16.msra.mxu0 %v3099_v31 }
  0x1c   :  { %2234 = vmatprep.subr.bf16.mxu0 %v2909_v3  ;;  %2195 = vmatpush3.bf16.msra.mxu1 %v3109_v33 }
  0x1d   :  { %2196 = vmatprep.subr.bf16.mxu1 %v2909_v3 }
  0x1f   :  { %2235 = vmatpush3.bf16.msra.mxu0 %v3118_v35 }
  0x20   :  { %2236 = vmatprep.subr.bf16.mxu0 %v2909_v3  ;;  %2197 = vmatpush3.bf16.msra.mxu1 %v3129_v36 }
  0x21   :  { %2202 = vmatprep.subr.bf16.mxu1 %v2909_v3 }
  0x23   :  { %2237 = vmatpush3.bf16.msra.mxu0 %v3136_v37 }
  0x24   :  { %2242 = vmatprep.subr.bf16.mxu0 %v2909_v3 }
  0xd9   :  { %v3039_v10 = vpop.f32.mrb[0].mxu0 }
  0xda   :  { %v142_v11 = vpop.f32.mrb[1].mxu0 }
  0xdb   :  { %v143_v12 = vadd.f32 %v3037_v9, %v142_v11  ;;  %v3042_v13 = vpop.f32.mrb[2].mxu0 }
  0xdc   :  { %v3044_v14 = vpop.f32.mrb[3].mxu0 }
  0xdd   :  { %v1879_v15 = vmul.f32 -1.442695, %v143_v12  ;;  %v146_v60 = vadd.f32 %v3037_v9, %v3044_v14 }
  0xdf   :  { %2787 = vpow2.f32 %v1879_v15 }
  0xe1   :  { %v3241_v56 = vpop.f32.mrb[4].mxu0 }
  0xe2   :  { %v3243_v57 = vpop.f32.mrb[5].mxu0 }
  0xe3   :  { %v3245_v58 = vpop.f32.mrb[6].mxu0 }
  0xe4   :  { %v3247_v59 = vpop.f32.mrb[7].mxu0 }
  0xe9   :  { %v2788_v16 = vpop.eup %2787 }
  0xea   :  { %v240_v17 = vadd.f32 1.0, %v2788_v16 }
  0xec   :  { %2789 = vrcp.f32 %v240_v17  ;;  %v3254_v17 = vld [vmem:[%s3936_s6] ss:$0 sm:$0xff] }
  0xf6   :  { %v2790_v25 = vpop.eup %2789 }
  0xf7   :  { %v243_v26 = vmul.f32 2.0, %v2790_v25 }
  0xf9   :  { %v1880_v32 = vadd.f32 -1.0, %v243_v26 }
  0xfb   :  { %v245_v34 = vsel %vm3091_vm3, %v1880_v32, %v2790_v25 }
  0xfc   :  { %250 = vrot.lane.b32.xlu1 %v245_v34, %s2911_s28  ;;  %246 = vrot.lane.b32.xlu0 %v245_v34, %s2912_s29 }
 0x100   :  { %248 = vrot.lane.b32.xlu0 %v245_v34, %s2913_s16 }
 0x16e   :  { %v247_v38 = vpop.permute.xlu0 %246  ;;  %v251_v39 = vpop.permute.xlu1 %250 }
 0x16f   :  { %v253_v41 = vmul.f32 %v251_v39, %v247_v38 }
 0x172   :  { %v249_v40 = vpop.permute.xlu0 %248 }
 0x173   :  { %v252_v42 = vmul.f32 0.0, %v249_v40 }
 0x175   :  { %v3144_v43 = vadd.f32 %v253_v41, %v252_v42 }
 0x177   :  { %2791 = vtanh.f32 %v3144_v43 }
 0x181   :  { %v2792_v44 = vpop.eup %2791 }
 0x182   :  { %v256_v45 = vmul.f32 %v2792_v44, %v245_v34 }
 0x184   :  { %v257_v47 = vpack.c.bf16 %v256_v45, %v256_v45 }
 0x186   :  { %2199 = vmatmul.mubr.bf16.vlgmr.msra.gmra.mrb[0].mxu1 %v257_v47  ;;  %2239 = vmatmul.mubr.bf16.vlgmr.msra.gmra.mrb[8].mxu0 %v257_v47 }
 0x187   :  { %2203 = vmatpush3.bf16.msra.mxu1 %v3150_v46  ;;  %2218 = vmatprep.mubr.msk.bf16.mxu1 %vm2910_vm4, %v2909_v3 }
 0x188   :  { %2204 = vmatprep.subr.bf16.mxu1 %v2909_v3  ;;  %2243 = vmatpush3.bf16.msra.mxu0 %v3001_v4 }
 0x189   :  { %2244 = vmatprep.subr.bf16.mxu0 %v2909_v3  ;;  %2258 = vmatprep.mubr.msk.bf16.mxu0 %vm2910_vm4, %v2909_v3 }
 0x18b   :  { %2205 = vmatpush3.bf16.msra.mxu1 %v3156_v48 }
 0x18c   :  { %2206 = vmatprep.subr.bf16.mxu1 %v2909_v3  ;;  %2245 = vmatpush3.bf16.msra.mxu0 %v3013_v6 }
 0x18d   :  { %2246 = vmatprep.subr.bf16.mxu0 %v2909_v3 }
 0x18f   :  { %2207 = vmatpush3.bf16.msra.mxu1 %v3169_v49 }
 0x190   :  { %2208 = vmatprep.subr.bf16.mxu1 %v2909_v3  ;;  %2247 = vmatpush3.bf16.msra.mxu0 %v3026_v8 }
 0x191   :  { %2248 = vmatprep.subr.bf16.mxu0 %v2909_v3 }
 0x193   :  { %2209 = vmatpush3.bf16.msra.mxu1 %v3178_v50 }
 0x194   :  { %2210 = vmatprep.subr.bf16.mxu1 %v2909_v3  ;;  %2249 = vmatpush3.bf16.msra.mxu0 %v3055_v20 }
 0x195   :  { %2250 = vmatprep.subr.bf16.mxu0 %v2909_v3 }
 0x197   :  { %2211 = vmatpush3.bf16.msra.mxu1 %v3187_v51 }
 0x198   :  { %2212 = vmatprep.subr.bf16.mxu1 %v2909_v3  ;;  %2251 = vmatpush3.bf16.msra.mxu0 %v3069_v23 }
 0x199   :  { %2252 = vmatprep.subr.bf16.mxu0 %v2909_v3 }
 0x19b   :  { %2213 = vmatpush3.bf16.msra.mxu1 %v3196_v52 }
 0x19c   :  { %2214 = vmatprep.subr.bf16.mxu1 %v2909_v3  ;;  %2253 = vmatpush3.bf16.msra.mxu0 %v3086_v28 }
 0x19d   :  { %2254 = vmatprep.subr.bf16.mxu0 %v2909_v3 }
 0x19f   :  { %2215 = vmatpush3.bf16.msra.mxu1 %v3205_v53 }
 0x1a0   :  { %2216 = vmatprep.subr.bf16.mxu1 %v2909_v3  ;;  %2255 = vmatpush3.bf16.msra.mxu0 %v3109_v33 }
 0x1a1   :  { %2256 = vmatprep.subr.bf16.mxu0 %v2909_v3 }
 0x1a3   :  { %2217 = vmatpush3.bf16.msra.mxu1 %v3214_v54 }
 0x1a4   :  { %2282 = vmatprep.subr.bf16.mxu1 %v2909_v3  ;;  %2257 = vmatpush3.bf16.msra.mxu0 %v3129_v36 }
 0x1a5   :  { %2262 = vmatprep.subr.bf16.mxu0 %v2909_v3 }
 0x1a6   :  { %2219 = vmatmul.mubr.bf16.vlgmr.msra.gmra.mrb[0].mxu1 %v2914_v55 }
 0x1a7   :  { %2283 = vmatpush3.bf16.msra.mxu1 %v3007_v5  ;;  %2298 = vmatprep.mubr.msk.bf16.mxu1 %vm2910_vm4, %v2909_v3 }
 0x1a8   :  { %2284 = vmatprep.subr.bf16.mxu1 %v2909_v3 }
 0x1ab   :  { %2285 = vmatpush3.bf16.msra.mxu1 %v3020_v7 }
 0x1ac   :  { %2286 = vmatprep.subr.bf16.mxu1 %v2909_v3 }
 0x1af   :  { %2287 = vmatpush3.bf16.msra.mxu1 %v3049_v19 }
 0x1b0   :  { %2288 = vmatprep.subr.bf16.mxu1 %v2909_v3 }
 0x1b3   :  { %2289 = vmatpush3.bf16.msra.mxu1 %v3062_v22 }
 0x1b4   :  { %2290 = vmatprep.subr.bf16.mxu1 %v2909_v3 }
 0x1b7   :  { %2291 = vmatpush3.bf16.msra.mxu1 %v3075_v24 }
 0x1b8   :  { %2292 = vmatprep.subr.bf16.mxu1 %v2909_v3 }
 0x1bb   :  { %2293 = vmatpush3.bf16.msra.mxu1 %v3099_v31 }
 0x1bc   :  { %2294 = vmatprep.subr.bf16.mxu1 %v2909_v3 }
 0x1bf   :  { %2295 = vmatpush3.bf16.msra.mxu1 %v3118_v35 }
 0x1c0   :  { %2296 = vmatprep.subr.bf16.mxu1 %v2909_v3 }
 0x1c3   :  { %2297 = vmatpush3.bf16.msra.mxu1 %v3136_v37 }
 0x1c4   :  { %2302 = vmatprep.subr.bf16.mxu1 %v2909_v3 }
 0x259   :  { %v539_v61 = vpop.f32.mrb[8].mxu0 }
 0x25a   :  { %v545_v62 = vadd.f32 %v539_v61, %v146_v60  ;;  %v2240_v63 = vpop.f32.mrb[9].mxu0 }
 0x25b   :  { %v542_v0 = vpop.f32.mrb[10].mxu0 }
 0x25c   :  { %v1907_v1 = vmul.f32 -1.442695, %v545_v62  ;;  %v2241_v2 = vpop.f32.mrb[11].mxu0 }
 0x25e   :  { %2793 = vpow2.f32 %v1907_v1 }
 0x268   :  { %v2794_v11 = vpop.eup %2793 }
 0x269   :  { %v549_v12 = vadd.f32 1.0, %v2794_v11 }
 0x26b   :  { %2795 = vrcp.f32 %v549_v12 }
 0x275   :  { %v2796_v15 = vpop.eup %2795 }
 0x276   :  { %v552_v16 = vmul.f32 2.0, %v2796_v15 }
 0x278   :  { %v1908_v18 = vadd.f32 -1.0, %v552_v16 }
 0x279   :  { %v428_v21 = vpop.f32.mrb[0].mxu1 }
 0x27a   :  { %v2711_v14 = vadd.f32 %v3254_v17, %v428_v21  ;;  %v2220_v25 = vpop.f32.mrb[1].mxu1  ;;  %v554_v26 = vsel %vm3091_vm3, %v1908_v18, %v2796_v15 }
 0x27b   :  { %v431_v27 = vpop.f32.mrb[2].mxu1  ;;  %557 = vrot.lane.b32.xlu0 %v554_v26, %s2913_s16  ;;  %555 = vrot.lane.b32.xlu1 %v554_v26, %s2912_s29 }
 0x27c   :  { %v1897_v29 = vmul.f32 -1.442695, %v2711_v14  ;;  %v2221_v32 = vpop.f32.mrb[3].mxu1  ;;  %v151_v14 = vadd.f32 %v3039_v10, %v3037_v9 }
 0x27e   :  { %2797 = vpow2.f32 %v1897_v29 }
 0x27f   :  { %559 = vrot.lane.b32.xlu1 %v554_v26, %s2911_s28 }
 0x288   :  { %v2798_v34 = vpop.eup %2797 }
 0x289   :  { %v438_v38 = vadd.f32 1.0, %v2798_v34 }
 0x28b   :  { %2799 = vrcp.f32 %v438_v38 }
 0x295   :  { %v2800_v39 = vpop.eup %2799 }
 0x296   :  { %v441_v40 = vmul.f32 2.0, %v2800_v39 }
 0x298   :  { %v1898_v41 = vadd.f32 -1.0, %v441_v40 }
 0x29a   :  { %v443_v42 = vsel %vm3091_vm3, %v1898_v41, %v2800_v39 }
 0x29b   :  { %446 = vrot.lane.b32.xlu1 %v443_v42, %s2913_s16  ;;  %444 = vrot.lane.b32.xlu0 %v443_v42, %s2912_s29 }
 0x29f   :  { %448 = vrot.lane.b32.xlu0 %v443_v42, %s2911_s28 }
 0x2ed   :  { %v556_v44 = vpop.permute.xlu1 %555  ;;  %v558_v45 = vpop.permute.xlu0 %557 }
 0x2ee   :  { %v561_v55 = vmul.f32 %v558_v45, %v3144_v43 }
 0x2f1   :  { %v560_v47 = vpop.permute.xlu1 %559 }
 0x2f2   :  { %v562_v60 = vmul.f32 %v560_v47, %v556_v44 }
 0x2f4   :  { %v3268_v61 = vadd.f32 %v562_v60, %v561_v55 }
 0x2f6   :  { %2801 = vtanh.f32 %v3268_v61 }
 0x300   :  { %v2802_v62 = vpop.eup %2801 }
 0x301   :  { %v565_v63 = vmul.f32 %v2802_v62, %v554_v26 }
 0x303   :  { %v566_v0 = vpack.c.bf16 %v565_v63, %v565_v63 }
 0x305   :  { %2259 = vmatmul.mubr.bf16.vlgmr.msra.gmra.mrb[12].mxu0 %v566_v0  ;;  %2299 = vmatmul.mubr.bf16.vlgmr.msra.gmra.mrb[4].mxu1 %v566_v0 }
 0x306   :  { %2263 = vmatpush3.bf16.msra.mxu0 %v3150_v46  ;;  %2278 = vmatprep.mubr.msk.bf16.mxu0 %vm2910_vm4, %v2909_v3 }
 0x307   :  { %2264 = vmatprep.subr.bf16.mxu0 %v2909_v3  ;;  %2303 = vmatpush3.bf16.msra.mxu1 %v3001_v4 }
 0x308   :  { %2304 = vmatprep.subr.bf16.mxu1 %v2909_v3  ;;  %2318 = vmatprep.mubr.msk.bf16.mxu1 %vm2910_vm4, %v2909_v3 }
 0x30a   :  { %2265 = vmatpush3.bf16.msra.mxu0 %v3156_v48 }
 0x30b   :  { %2266 = vmatprep.subr.bf16.mxu0 %v2909_v3  ;;  %2305 = vmatpush3.bf16.msra.mxu1 %v3013_v6 }
 0x30c   :  { %2306 = vmatprep.subr.bf16.mxu1 %v2909_v3 }
 0x30d   :  { %v445_v43 = vpop.permute.xlu0 %444  ;;  %v447_v1 = vpop.permute.xlu1 %446 }
 0x30e   :  { %2267 = vmatpush3.bf16.msra.mxu0 %v3169_v49  ;;  %v450_v11 = vmul.f32 0.0, %v447_v1 }
 0x30f   :  { %2268 = vmatprep.subr.bf16.mxu0 %v2909_v3  ;;  %2307 = vmatpush3.bf16.msra.mxu1 %v3026_v8 }
 0x310   :  { %2308 = vmatprep.subr.bf16.mxu1 %v2909_v3 }
 0x311   :  { %v449_v2 = vpop.permute.xlu0 %448 }
 0x312   :  { %v451_v12 = vmul.f32 %v449_v2, %v445_v43  ;;  %2269 = vmatpush3.bf16.msra.mxu0 %v3178_v50 }
 0x313   :  { %2270 = vmatprep.subr.bf16.mxu0 %v2909_v3  ;;  %2309 = vmatpush3.bf16.msra.mxu1 %v3055_v20 }
 0x314   :  { %v3290_v15 = vadd.f32 %v451_v12, %v450_v11  ;;  %2310 = vmatprep.subr.bf16.mxu1 %v2909_v3 }
 0x316   :  { %2803 = vtanh.f32 %v3290_v15  ;;  %2271 = vmatpush3.bf16.msra.mxu0 %v3187_v51 }
 0x317   :  { %2272 = vmatprep.subr.bf16.mxu0 %v2909_v3  ;;  %2311 = vmatpush3.bf16.msra.mxu1 %v3069_v23 }
 0x318   :  { %2312 = vmatprep.subr.bf16.mxu1 %v2909_v3 }
 0x31a   :  { %2273 = vmatpush3.bf16.msra.mxu0 %v3196_v52 }
 0x31b   :  { %2274 = vmatprep.subr.bf16.mxu0 %v2909_v3  ;;  %2313 = vmatpush3.bf16.msra.mxu1 %v3086_v28 }
 0x31c   :  { %2314 = vmatprep.subr.bf16.mxu1 %v2909_v3 }
 0x31e   :  { %2275 = vmatpush3.bf16.msra.mxu0 %v3205_v53 }
 0x31f   :  { %2276 = vmatprep.subr.bf16.mxu0 %v2909_v3  ;;  %2315 = vmatpush3.bf16.msra.mxu1 %v3109_v33 }
 0x320   :  { %v2804_v16 = vpop.eup %2803  ;;  %2316 = vmatprep.subr.bf16.mxu1 %v2909_v3 }
 0x321   :  { %v454_v18 = vmul.f32 %v2804_v16, %v443_v42 }
 0x322   :  { %2277 = vmatpush3.bf16.msra.mxu0 %v3214_v54 }
 0x323   :  { %v567_v21 = vpack.c.bf16 %v454_v18, %v454_v18  ;;  %2342 = vmatprep.subr.bf16.mxu0 %v2909_v3  ;;  %2317 = vmatpush3.bf16.msra.mxu1 %v3129_v36 }
 0x324   :  { %2322 = vmatprep.subr.bf16.mxu1 %v2909_v3 }
 0x325   :  { %2279 = vmatmul.mubr.bf16.vlgmr.msra.gmra.mrb[12].mxu0 %v567_v21 }
 0x326   :  { %2343 = vmatpush3.bf16.msra.mxu0 %v3007_v5  ;;  %2358 = vmatprep.mubr.msk.bf16.mxu0 %vm2910_vm4, %v2909_v3 }
 0x327   :  { %2344 = vmatprep.subr.bf16.mxu0 %v2909_v3 }
 0x32a   :  { %2345 = vmatpush3.bf16.msra.mxu0 %v3020_v7 }
 0x32b   :  { %2346 = vmatprep.subr.bf16.mxu0 %v2909_v3 }
 0x32e   :  { %2347 = vmatpush3.bf16.msra.mxu0 %v3049_v19 }
 0x32f   :  { %2348 = vmatprep.subr.bf16.mxu0 %v2909_v3 }
 0x332   :  { %2349 = vmatpush3.bf16.msra.mxu0 %v3062_v22 }
 0x333   :  { %2350 = vmatprep.subr.bf16.mxu0 %v2909_v3 }
 0x336   :  { %2351 = vmatpush3.bf16.msra.mxu0 %v3075_v24 }
 0x337   :  { %2352 = vmatprep.subr.bf16.mxu0 %v2909_v3 }
 0x33a   :  { %2353 = vmatpush3.bf16.msra.mxu0 %v3099_v31 }
 0x33b   :  { %2354 = vmatprep.subr.bf16.mxu0 %v2909_v3 }
 0x33e   :  { %2355 = vmatpush3.bf16.msra.mxu0 %v3118_v35 }
 0x33f   :  { %2356 = vmatprep.subr.bf16.mxu0 %v2909_v3 }
 0x342   :  { %2357 = vmatpush3.bf16.msra.mxu0 %v3136_v37 }
 0x343   :  { %2362 = vmatprep.subr.bf16.mxu0 %v2909_v3 }
 0x3d8   :  { %v705_v25 = vpop.f32.mrb[4].mxu1 }
 0x3d9   :  { %v711_v26 = vadd.f32 %v705_v25, %v151_v14  ;;  %v2300_v27 = vpop.f32.mrb[5].mxu1 }
 0x3da   :  { %v708_v29 = vpop.f32.mrb[6].mxu1 }
 0x3db   :  { %v1911_v32 = vmul.f32 -1.442695, %v711_v26  ;;  %v2301_v34 = vpop.f32.mrb[7].mxu1 }
 0x3dd   :  { %2805 = vpow2.f32 %v1911_v32 }
 0x3e7   :  { %v2806_v38 = vpop.eup %2805 }
 0x3e8   :  { %v715_v39 = vadd.f32 1.0, %v2806_v38 }
 0x3ea   :  { %2807 = vrcp.f32 %v715_v39 }
 0x3f4   :  { %v2808_v40 = vpop.eup %2807 }
 0x3f5   :  { %v718_v41 = vmul.f32 2.0, %v2808_v40 }
 0x3f7   :  { %v1912_v42 = vadd.f32 -1.0, %v718_v41 }
 0x3f8   :  { %v642_v44 = vpop.f32.mrb[12].mxu0 }
 0x3f9   :  { %v2712_v45 = vadd.f32 %v3254_v17, %v642_v44  ;;  %v2280_v47 = vpop.f32.mrb[13].mxu0  ;;  %v720_v10 = vsel %vm3091_vm3, %v1912_v42, %v2808_v40 }
 0x3fa   :  { %v645_v55 = vpop.f32.mrb[14].mxu0  ;;  %723 = vrot.lane.b32.xlu0 %v720_v10, %s2913_s16  ;;  %721 = vrot.lane.b32.xlu1 %v720_v10, %s2912_s29 }
 0x3fb   :  { %v1909_v60 = vmul.f32 -1.442695, %v2712_v45  ;;  %v2281_v62 = vpop.f32.mrb[15].mxu0 }
 0x3fd   :  { %2809 = vpow2.f32 %v1909_v60 }
 0x3fe   :  { %725 = vrot.lane.b32.xlu1 %v720_v10, %s2911_s28 }
 0x407   :  { %v2810_v63 = vpop.eup %2809 }
 0x408   :  { %v652_v0 = vadd.f32 1.0, %v2810_v63 }
 0x40a   :  { %2811 = vrcp.f32 %v652_v0 }
 0x414   :  { %v2812_v43 = vpop.eup %2811 }
 0x415   :  { %v655_v1 = vmul.f32 2.0, %v2812_v43 }
 0x417   :  { %v1910_v2 = vadd.f32 -1.0, %v655_v1 }
 0x419   :  { %v657_v11 = vsel %vm3091_vm3, %v1910_v2, %v2812_v43 }
 0x41a   :  { %658 = vrot.lane.b32.xlu0 %v657_v11, %s2912_s29  ;;  %660 = vrot.lane.b32.xlu1 %v657_v11, %s2913_s16 }
 0x41e   :  { %662 = vrot.lane.b32.xlu0 %v657_v11, %s2911_s28 }
 0x46c   :  { %v722_v12 = vpop.permute.xlu1 %721  ;;  %v724_v16 = vpop.permute.xlu0 %723 }
 0x46d   :  { %v727_v21 = vmul.f32 %v724_v16, %v3268_v61 }
 0x470   :  { %v726_v18 = vpop.permute.xlu1 %725 }
 0x471   :  { %v728_v14 = vmul.f32 %v726_v18, %v722_v12 }
 0x473   :  { %v3342_v25 = vadd.f32 %v728_v14, %v727_v21 }
 0x475   :  { %2813 = vtanh.f32 %v3342_v25 }
 0x47f   :  { %v2814_v26 = vpop.eup %2813 }
 0x480   :  { %v731_v27 = vmul.f32 %v2814_v26, %v720_v10 }
 0x482   :  { %v732_v29 = vpack.c.bf16 %v731_v27, %v731_v27 }
 0x484   :  { %2319 = vmatmul.mubr.bf16.vlgmr.msra.gmra.mrb[8].mxu1 %v732_v29  ;;  %2359 = vmatmul.mubr.bf16.vlgmr.msra.gmra.mrb[16].mxu0 %v732_v29 }
 0x485   :  { %2323 = vmatpush3.bf16.msra.mxu1 %v3150_v46  ;;  %2338 = vmatprep.mubr.msk.bf16.mxu1 %vm2910_vm4, %v2909_v3 }
 0x486   :  { %2324 = vmatprep.subr.bf16.mxu1 %v2909_v3  ;;  %2363 = vmatpush3.bf16.msra.mxu0 %v3001_v4 }
 0x487   :  { %2364 = vmatprep.subr.bf16.mxu0 %v2909_v3  ;;  %2378 = vmatprep.mubr.msk.bf16.mxu0 %vm2910_vm4, %v2909_v3 }
 0x489   :  { %2325 = vmatpush3.bf16.msra.mxu1 %v3156_v48 }
 0x48a   :  { %2326 = vmatprep.subr.bf16.mxu1 %v2909_v3  ;;  %2365 = vmatpush3.bf16.msra.mxu0 %v3013_v6 }
 0x48b   :  { %2366 = vmatprep.subr.bf16.mxu0 %v2909_v3 }
 0x48c   :  { %v659_v61 = vpop.permute.xlu0 %658  ;;  %v661_v32 = vpop.permute.xlu1 %660 }
 0x48d   :  { %2327 = vmatpush3.bf16.msra.mxu1 %v3169_v49  ;;  %v664_v38 = vmul.f32 %v661_v32, %v3290_v15 }
 0x48e   :  { %2328 = vmatprep.subr.bf16.mxu1 %v2909_v3  ;;  %2367 = vmatpush3.bf16.msra.mxu0 %v3026_v8 }
 0x48f   :  { %2368 = vmatprep.subr.bf16.mxu0 %v2909_v3 }
 0x490   :  { %v663_v34 = vpop.permute.xlu0 %662 }
 0x491   :  { %v665_v39 = vmul.f32 %v663_v34, %v659_v61  ;;  %2329 = vmatpush3.bf16.msra.mxu1 %v3178_v50 }
 0x492   :  { %2330 = vmatprep.subr.bf16.mxu1 %v2909_v3  ;;  %2369 = vmatpush3.bf16.msra.mxu0 %v3055_v20 }
 0x493   :  { %v3365_v40 = vadd.f32 %v665_v39, %v664_v38  ;;  %2370 = vmatprep.subr.bf16.mxu0 %v2909_v3 }
 0x495   :  { %2815 = vtanh.f32 %v3365_v40  ;;  %2331 = vmatpush3.bf16.msra.mxu1 %v3187_v51 }
 0x496   :  { %2332 = vmatprep.subr.bf16.mxu1 %v2909_v3  ;;  %2371 = vmatpush3.bf16.msra.mxu0 %v3069_v23 }
 0x497   :  { %2372 = vmatprep.subr.bf16.mxu0 %v2909_v3 }
 0x499   :  { %2333 = vmatpush3.bf16.msra.mxu1 %v3196_v52 }
 0x49a   :  { %2334 = vmatprep.subr.bf16.mxu1 %v2909_v3  ;;  %2373 = vmatpush3.bf16.msra.mxu0 %v3086_v28 }
 0x49b   :  { %2374 = vmatprep.subr.bf16.mxu0 %v2909_v3 }
 0x49d   :  { %2335 = vmatpush3.bf16.msra.mxu1 %v3205_v53 }
 0x49e   :  { %2336 = vmatprep.subr.bf16.mxu1 %v2909_v3  ;;  %2375 = vmatpush3.bf16.msra.mxu0 %v3109_v33 }
 0x49f   :  { %v2816_v15 = vpop.eup %2815  ;;  %2376 = vmatprep.subr.bf16.mxu0 %v2909_v3 }
 0x4a0   :  { %v668_v41 = vmul.f32 %v2816_v15, %v657_v11 }
 0x4a1   :  { %2337 = vmatpush3.bf16.msra.mxu1 %v3214_v54 }
 0x4a2   :  { %v733_v42 = vpack.c.bf16 %v668_v41, %v668_v41  ;;  %2402 = vmatprep.subr.bf16.mxu1 %v2909_v3  ;;  %2377 = vmatpush3.bf16.msra.mxu0 %v3129_v36 }
 0x4a3   :  { %2382 = vmatprep.subr.bf16.mxu0 %v2909_v3 }
 0x4a4   :  { %2339 = vmatmul.mubr.bf16.vlgmr.msra.gmra.mrb[8].mxu1 %v733_v42 }
 0x4a5   :  { %2403 = vmatpush3.bf16.msra.mxu1 %v3007_v5  ;;  %2418 = vmatprep.mubr.msk.bf16.mxu1 %vm2910_vm4, %v2909_v3  ;;  %v154_v5 = vadd.f32 %v3042_v13, %v3037_v9 }
 0x4a6   :  { %2404 = vmatprep.subr.bf16.mxu1 %v2909_v3 }
 0x4a9   :  { %2405 = vmatpush3.bf16.msra.mxu1 %v3020_v7 }
 0x4aa   :  { %2406 = vmatprep.subr.bf16.mxu1 %v2909_v3 }
 0x4ad   :  { %2407 = vmatpush3.bf16.msra.mxu1 %v3049_v19 }
 0x4ae   :  { %2408 = vmatprep.subr.bf16.mxu1 %v2909_v3 }
 0x4b1   :  { %2409 = vmatpush3.bf16.msra.mxu1 %v3062_v22 }
 0x4b2   :  { %2410 = vmatprep.subr.bf16.mxu1 %v2909_v3 }
 0x4b5   :  { %2411 = vmatpush3.bf16.msra.mxu1 %v3075_v24 }
 0x4b6   :  { %2412 = vmatprep.subr.bf16.mxu1 %v2909_v3 }
 0x4b9   :  { %2413 = vmatpush3.bf16.msra.mxu1 %v3099_v31 }
 0x4ba   :  { %2414 = vmatprep.subr.bf16.mxu1 %v2909_v3 }
 0x4bd   :  { %2415 = vmatpush3.bf16.msra.mxu1 %v3118_v35 }
 0x4be   :  { %2416 = vmatprep.subr.bf16.mxu1 %v2909_v3 }
 0x4c1   :  { %2417 = vmatpush3.bf16.msra.mxu1 %v3136_v37 }
 0x4c2   :  { %2422 = vmatprep.subr.bf16.mxu1 %v2909_v3 }
 0x557   :  { %v871_v44 = vpop.f32.mrb[16].mxu0 }
 0x558   :  { %v877_v45 = vadd.f32 %v871_v44, %v154_v5  ;;  %v2360_v47 = vpop.f32.mrb[17].mxu0 }
 0x559   :  { %v874_v10 = vpop.f32.mrb[18].mxu0 }
 0x55a   :  { %v1915_v55 = vmul.f32 -1.442695, %v877_v45  ;;  %v2361_v60 = vpop.f32.mrb[19].mxu0 }
 0x55c   :  { %2817 = vpow2.f32 %v1915_v55 }
 0x566   :  { %v2818_v62 = vpop.eup %2817 }
 0x567   :  { %v881_v63 = vadd.f32 1.0, %v2818_v62 }
 0x569   :  { %2819 = vrcp.f32 %v881_v63 }
 0x573   :  { %v2820_v0 = vpop.eup %2819 }
 0x574   :  { %v884_v43 = vmul.f32 2.0, %v2820_v0 }
 0x576   :  { %v1916_v1 = vadd.f32 -1.0, %v884_v43 }
 0x577   :  { %v808_v2 = vpop.f32.mrb[8].mxu1 }
 0x578   :  { %v2713_v11 = vadd.f32 %v3254_v17, %v808_v2  ;;  %v2340_v12 = vpop.f32.mrb[9].mxu1  ;;  %v886_v13 = vsel %vm3091_vm3, %v1916_v1, %v2820_v0 }
 0x579   :  { %v811_v16 = vpop.f32.mrb[10].mxu1  ;;  %889 = vrot.lane.b32.xlu0 %v886_v13, %s2913_s16  ;;  %887 = vrot.lane.b32.xlu1 %v886_v13, %s2912_s29 }
 0x57a   :  { %v1913_v18 = vmul.f32 -1.442695, %v2713_v11  ;;  %v2341_v21 = vpop.f32.mrb[11].mxu1 }
 0x57c   :  { %2821 = vpow2.f32 %v1913_v18 }
 0x57d   :  { %891 = vrot.lane.b32.xlu1 %v886_v13, %s2911_s28 }
 0x586   :  { %v2822_v14 = vpop.eup %2821 }
 0x587   :  { %v818_v26 = vadd.f32 1.0, %v2822_v14 }
 0x589   :  { %2823 = vrcp.f32 %v818_v26 }
 0x593   :  { %v2824_v27 = vpop.eup %2823 }
 0x594   :  { %v821_v29 = vmul.f32 2.0, %v2824_v27 }
 0x596   :  { %v1914_v61 = vadd.f32 -1.0, %v821_v29 }
 0x598   :  { %v823_v32 = vsel %vm3091_vm3, %v1914_v61, %v2824_v27 }
 0x599   :  { %826 = vrot.lane.b32.xlu1 %v823_v32, %s2913_s16  ;;  %824 = vrot.lane.b32.xlu0 %v823_v32, %s2912_s29 }
 0x59d   :  { %828 = vrot.lane.b32.xlu0 %v823_v32, %s2911_s28 }
 0x5eb   :  { %v888_v34 = vpop.permute.xlu1 %887  ;;  %v890_v38 = vpop.permute.xlu0 %889 }
 0x5ec   :  { %v893_v15 = vmul.f32 %v890_v38, %v3342_v25 }
 0x5ef   :  { %v892_v39 = vpop.permute.xlu1 %891 }
 0x5f0   :  { %v894_v41 = vmul.f32 %v892_v39, %v888_v34 }
 0x5f2   :  { %v3417_v42 = vadd.f32 %v894_v41, %v893_v15  ;;  %v3507_v15 = vld [vmem:[%s3932_s4] sm:$0xff]  }
 0x5f4   :  { %2825 = vtanh.f32 %v3417_v42 }
 0x5fe   :  { %v2826_v5 = vpop.eup %2825 }
 0x5ff   :  { %v897_v44 = vmul.f32 %v2826_v5, %v886_v13 }
 0x601   :  { %v898_v45 = vpack.c.bf16 %v897_v44, %v897_v44 }
 0x603   :  { %2379 = vmatmul.mubr.bf16.vlgmr.msra.gmra.mrb[20].mxu0 %v898_v45  ;;  %2419 = vmatmul.mubr.bf16.vlgmr.msra.gmra.mrb[12].mxu1 %v898_v45 }
 0x604   :  { %2383 = vmatpush3.bf16.msra.mxu0 %v3150_v46  ;;  %2398 = vmatprep.mubr.msk.bf16.mxu0 %vm2910_vm4, %v2909_v3 }
 0x605   :  { %2384 = vmatprep.subr.bf16.mxu0 %v2909_v3  ;;  %2423 = vmatpush3.bf16.msra.mxu1 %v3001_v4 }
 0x606   :  { %2424 = vmatprep.subr.bf16.mxu1 %v2909_v3  ;;  %2438 = vmatprep.mubr.msk.bf16.mxu1 %vm2910_vm4, %v2909_v3 }
 0x608   :  { %2385 = vmatpush3.bf16.msra.mxu0 %v3156_v48 }
 0x609   :  { %2386 = vmatprep.subr.bf16.mxu0 %v2909_v3  ;;  %2425 = vmatpush3.bf16.msra.mxu1 %v3013_v6 }
 0x60a   :  { %2426 = vmatprep.subr.bf16.mxu1 %v2909_v3 }
 0x60b   :  { %v825_v25 = vpop.permute.xlu0 %824  ;;  %v827_v47 = vpop.permute.xlu1 %826 }
 0x60c   :  { %2387 = vmatpush3.bf16.msra.mxu0 %v3169_v49  ;;  %v830_v10 = vmul.f32 %v827_v47, %v3365_v40  ;;  %v3558_v47 = vld [vmem:[%s3932_s4 + $0x28] sm:$0xff]  }
 0x60d   :  { %2388 = vmatprep.subr.bf16.mxu0 %v2909_v3  ;;  %2427 = vmatpush3.bf16.msra.mxu1 %v3026_v8 }
 0x60e   :  { %2428 = vmatprep.subr.bf16.mxu1 %v2909_v3 }
 0x60f   :  { %v829_v4 = vpop.permute.xlu0 %828 }
 0x610   :  { %v831_v55 = vmul.f32 %v829_v4, %v825_v25  ;;  %2389 = vmatpush3.bf16.msra.mxu0 %v3178_v50 }
 0x611   :  { %2390 = vmatprep.subr.bf16.mxu0 %v2909_v3  ;;  %2429 = vmatpush3.bf16.msra.mxu1 %v3055_v20 }
 0x612   :  { %v3440_v6 = vadd.f32 %v831_v55, %v830_v10  ;;  %2430 = vmatprep.subr.bf16.mxu1 %v2909_v3  ;;  %v3594_v55 = vld [vmem:[%s3933_s2 + $0x10] sm:$0xff]  }
 0x614   :  { %2827 = vtanh.f32 %v3440_v6  ;;  %2391 = vmatpush3.bf16.msra.mxu0 %v3187_v51 }
 0x615   :  { %2392 = vmatprep.subr.bf16.mxu0 %v2909_v3  ;;  %2431 = vmatpush3.bf16.msra.mxu1 %v3069_v23 }
 0x616   :  { %2432 = vmatprep.subr.bf16.mxu1 %v2909_v3 }
 0x618   :  { %2393 = vmatpush3.bf16.msra.mxu0 %v3196_v52 }
 0x619   :  { %2394 = vmatprep.subr.bf16.mxu0 %v2909_v3  ;;  %2433 = vmatpush3.bf16.msra.mxu1 %v3086_v28  ;;  %v3463_v28 = vld [vmem:[%s3933_s2] sm:$0xff]  }
 0x61a   :  { %2434 = vmatprep.subr.bf16.mxu1 %v2909_v3 }
 0x61c   :  { %2395 = vmatpush3.bf16.msra.mxu0 %v3205_v53 }
 0x61d   :  { %2396 = vmatprep.subr.bf16.mxu0 %v2909_v3  ;;  %2435 = vmatpush3.bf16.msra.mxu1 %v3109_v33 }
 0x61e   :  { %v2828_v8 = vpop.eup %2827  ;;  %2436 = vmatprep.subr.bf16.mxu1 %v2909_v3 }
 0x61f   :  { %v834_v20 = vmul.f32 %v2828_v8, %v823_v32  ;;  %v3608_v8 = vld [vmem:[%s3933_s2 + $0x20] sm:$0xff]  }
 0x620   :  { %2397 = vmatpush3.bf16.msra.mxu0 %v3214_v54 }
 0x621   :  { %v899_v23 = vpack.c.bf16 %v834_v20, %v834_v20  ;;  %2462 = vmatprep.subr.bf16.mxu0 %v2909_v3  ;;  %2437 = vmatpush3.bf16.msra.mxu1 %v3129_v36  ;;  %v3615_v20 = vld [vmem:[%s3933_s2 + $0x28] sm:$0xff]  }
 0x622   :  { %2442 = vmatprep.subr.bf16.mxu1 %v2909_v3 }
 0x623   :  { %2399 = vmatmul.mubr.bf16.vlgmr.msra.gmra.mrb[20].mxu0 %v899_v23  ;;  %v3622_v23 = vld [vmem:[%s3933_s2 + $0x30] sm:$0xff]  }
 0x624   :  { %2463 = vmatpush3.bf16.msra.mxu0 %v3463_v28  ;;  %2478 = vmatprep.mubr.msk.bf16.mxu0 %vm2910_vm4, %v2909_v3 }
 0x625   :  { %2464 = vmatprep.subr.bf16.mxu0 %v2909_v3 }
 0x628   :  { %2465 = vmatpush3.bf16.msra.mxu0 %v3020_v7  ;;  %v159_v7 = vadd.f32 %v3037_v9, %v3243_v57 }
 0x629   :  { %2466 = vmatprep.subr.bf16.mxu0 %v2909_v3 }
 0x62c   :  { %2467 = vmatpush3.bf16.msra.mxu0 %v3049_v19 }
 0x62d   :  { %2468 = vmatprep.subr.bf16.mxu0 %v2909_v3 }
 0x630   :  { %2469 = vmatpush3.bf16.msra.mxu0 %v3062_v22 }
 0x631   :  { %2470 = vmatprep.subr.bf16.mxu0 %v2909_v3 }
 0x634   :  { %2471 = vmatpush3.bf16.msra.mxu0 %v3075_v24 }
 0x635   :  { %2472 = vmatprep.subr.bf16.mxu0 %v2909_v3 }
 0x638   :  { %2473 = vmatpush3.bf16.msra.mxu0 %v3099_v31 }
 0x639   :  { %2474 = vmatprep.subr.bf16.mxu0 %v2909_v3 }
 0x63c   :  { %2475 = vmatpush3.bf16.msra.mxu0 %v3118_v35 }
 0x63d   :  { %2476 = vmatprep.subr.bf16.mxu0 %v2909_v3 }
 0x640   :  { %2477 = vmatpush3.bf16.msra.mxu0 %v3136_v37 }
 0x641   :  { %2482 = vmatprep.subr.bf16.mxu0 %v2909_v3 }
 0x6d6   :  { %v1037_v19 = vpop.f32.mrb[12].mxu1 }
 0x6d7   :  { %v1043_v22 = vadd.f32 %v1037_v19, %v159_v7  ;;  %v2420_v24 = vpop.f32.mrb[13].mxu1  ;;  %v3629_v7 = vld [vmem:[%s3933_s2 + $0x38] sm:$0xff]   ;;  %v3636_v19 = vld [vmem:[%s3934_s3] ss:$0 sm:$0xff] }
 0x6d8   :  { %v1040_v33 = vpop.f32.mrb[14].mxu1 }
 0x6d9   :  { %v1919_v36 = vmul.f32 -1.442695, %v1043_v22  ;;  %v2421_v40 = vpop.f32.mrb[15].mxu1  ;;  %v162_v22 = vadd.f32 %v3636_v19, %v3247_v59 }
 0x6db   :  { %2829 = vpow2.f32 %v1919_v36 }
 0x6e5   :  { %v2830_v31 = vpop.eup %2829 }
 0x6e6   :  { %v1047_v60 = vadd.f32 1.0, %v2830_v31 }
 0x6e8   :  { %2831 = vrcp.f32 %v1047_v60 }
 0x6f2   :  { %v2832_v35 = vpop.eup %2831 }
 0x6f3   :  { %v1050_v62 = vmul.f32 2.0, %v2832_v35 }
 0x6f5   :  { %v1920_v63 = vadd.f32 -1.0, %v1050_v62 }
 0x6f6   :  { %v974_v0 = vpop.f32.mrb[20].mxu0 }
 0x6f7   :  { %v2714_v37 = vadd.f32 %v3254_v17, %v974_v0  ;;  %v2400_v43 = vpop.f32.mrb[21].mxu0  ;;  %v1052_v9 = vsel %vm3091_vm3, %v1920_v63, %v2832_v35 }
 0x6f8   :  { %v977_v57 = vpop.f32.mrb[22].mxu0  ;;  %1055 = vrot.lane.b32.xlu0 %v1052_v9, %s2913_s16  ;;  %1053 = vrot.lane.b32.xlu1 %v1052_v9, %s2912_s29 }
 0x6f9   :  { %v1917_v1 = vmul.f32 -1.442695, %v2714_v37  ;;  %v2401_v2 = vpop.f32.mrb[23].mxu0 }
 0x6fb   :  { %2833 = vpow2.f32 %v1917_v1 }
 0x6fc   :  { %1057 = vrot.lane.b32.xlu1 %v1052_v9, %s2911_s28 }
 0x705   :  { %v2834_v11 = vpop.eup %2833 }
 0x706   :  { %v984_v12 = vadd.f32 1.0, %v2834_v11 }
 0x708   :  { %2835 = vrcp.f32 %v984_v12 }
 0x712   :  { %v2836_v13 = vpop.eup %2835 }
 0x713   :  { %v987_v16 = vmul.f32 2.0, %v2836_v13 }
 0x715   :  { %v1918_v18 = vadd.f32 -1.0, %v987_v16 }
 0x717   :  { %v989_v21 = vsel %vm3091_vm3, %v1918_v18, %v2836_v13 }
 0x718   :  { %990 = vrot.lane.b32.xlu0 %v989_v21, %s2912_s29  ;;  %992 = vrot.lane.b32.xlu1 %v989_v21, %s2913_s16 }
 0x71c   :  { %994 = vrot.lane.b32.xlu0 %v989_v21, %s2911_s28 }
 0x76a   :  { %v1054_v14 = vpop.permute.xlu1 %1053  ;;  %v1056_v26 = vpop.permute.xlu0 %1055 }
 0x76b   :  { %v1059_v29 = vmul.f32 %v1056_v26, %v3417_v42 }
 0x76e   :  { %v1058_v27 = vpop.permute.xlu1 %1057 }
 0x76f   :  { %v1060_v61 = vmul.f32 %v1058_v27, %v1054_v14 }
 0x771   :  { %v3497_v32 = vadd.f32 %v1060_v61, %v1059_v29 }
 0x773   :  { %2837 = vtanh.f32 %v3497_v32 }
 0x77d   :  { %v2838_v34 = vpop.eup %2837 }
 0x77e   :  { %v1063_v38 = vmul.f32 %v2838_v34, %v1052_v9 }
 0x780   :  { %v1064_v39 = vpack.c.bf16 %v1063_v38, %v1063_v38 }
 0x782   :  { %2439 = vmatmul.mubr.bf16.vlgmr.msra.gmra.mrb[16].mxu1 %v1064_v39  ;;  %2479 = vmatmul.mubr.bf16.vlgmr.msra.gmra.mrb[24].mxu0 %v1064_v39 }
 0x783   :  { %2443 = vmatpush3.bf16.msra.mxu1 %v3150_v46  ;;  %2458 = vmatprep.mubr.msk.bf16.mxu1 %vm2910_vm4, %v2909_v3  ;;  %v3518_v46 = vld [vmem:[%s3932_s4 + $0x8] sm:$0xff]  }
 0x784   :  { %2444 = vmatprep.subr.bf16.mxu1 %v2909_v3  ;;  %2483 = vmatpush3.bf16.msra.mxu0 %v3507_v15 }
 0x785   :  { %2484 = vmatprep.subr.bf16.mxu0 %v2909_v3  ;;  %2498 = vmatprep.mubr.msk.bf16.mxu0 %vm2910_vm4, %v2909_v3 }
 0x787   :  { %2445 = vmatpush3.bf16.msra.mxu1 %v3156_v48  ;;  %v3527_v48 = vld [vmem:[%s3932_s4 + $0x10] sm:$0xff]  }
 0x788   :  { %2446 = vmatprep.subr.bf16.mxu1 %v2909_v3  ;;  %2485 = vmatpush3.bf16.msra.mxu0 %v3518_v46 }
 0x789   :  { %2486 = vmatprep.subr.bf16.mxu0 %v2909_v3 }
 0x78a   :  { %v991_v41 = vpop.permute.xlu0 %990  ;;  %v993_v42 = vpop.permute.xlu1 %992 }
 0x78b   :  { %2447 = vmatpush3.bf16.msra.mxu1 %v3169_v49  ;;  %v996_v44 = vmul.f32 %v993_v42, %v3440_v6  ;;  %v3537_v49 = vld [vmem:[%s3932_s4 + $0x18] sm:$0xff]   ;;  %v3658_v42 = vld [vmem:[%s3935_s5] sm:$0xff]  }
 0x78c   :  { %2448 = vmatprep.subr.bf16.mxu1 %v2909_v3  ;;  %2487 = vmatpush3.bf16.msra.mxu0 %v3527_v48  ;;  %v3601_v6 = vld [vmem:[%s3933_s2 + $0x18] sm:$0xff]  }
 0x78d   :  { %2488 = vmatprep.subr.bf16.mxu0 %v2909_v3 }
 0x78e   :  { %v995_v5 = vpop.permute.xlu0 %994 }
 0x78f   :  { %v997_v45 = vmul.f32 %v995_v5, %v991_v41  ;;  %2449 = vmatpush3.bf16.msra.mxu1 %v3178_v50  ;;  %v3549_v50 = vld [vmem:[%s3932_s4 + $0x20] sm:$0xff]  }
 0x790   :  { %2450 = vmatprep.subr.bf16.mxu1 %v2909_v3  ;;  %2489 = vmatpush3.bf16.msra.mxu0 %v3537_v49 }
 0x791   :  { %v3540_v25 = vadd.f32 %v997_v45, %v996_v44  ;;  %2490 = vmatprep.subr.bf16.mxu0 %v2909_v3  ;;  %v3680_v44 = vld [vmem:[%s3935_s5 + $0x10] sm:$0xff]  }
 0x793   :  { %2839 = vtanh.f32 %v3540_v25  ;;  %2451 = vmatpush3.bf16.msra.mxu1 %v3187_v51  ;;  %v3567_v51 = vld [vmem:[%s3932_s4 + $0x30] sm:$0xff]  }
 0x794   :  { %2452 = vmatprep.subr.bf16.mxu1 %v2909_v3  ;;  %2491 = vmatpush3.bf16.msra.mxu0 %v3549_v50 }
 0x795   :  { %2492 = vmatprep.subr.bf16.mxu0 %v2909_v3 }
 0x797   :  { %2453 = vmatpush3.bf16.msra.mxu1 %v3196_v52 }
 0x798   :  { %2454 = vmatprep.subr.bf16.mxu1 %v2909_v3  ;;  %2493 = vmatpush3.bf16.msra.mxu0 %v3558_v47 }
 0x799   :  { %2494 = vmatprep.subr.bf16.mxu0 %v2909_v3 }
 0x79b   :  { %2455 = vmatpush3.bf16.msra.mxu1 %v3205_v53  ;;  %v3576_v53 = vld [vmem:[%s3932_s4 + $0x38] sm:$0xff]  }
 0x79c   :  { %2456 = vmatprep.subr.bf16.mxu1 %v2909_v3  ;;  %2495 = vmatpush3.bf16.msra.mxu0 %v3567_v51 }
 0x79d   :  { %v2840_v52 = vpop.eup %2839  ;;  %2496 = vmatprep.subr.bf16.mxu0 %v2909_v3 }
 0x79e   :  { %v1000_v4 = vmul.f32 %v2840_v52, %v989_v21 }
 0x79f   :  { %2457 = vmatpush3.bf16.msra.mxu1 %v3214_v54  ;;  %v3587_v54 = vld [vmem:[%s3933_s2 + $0x8] sm:$0xff]  }
 0x7a0   :  { %v1065_v10 = vpack.c.bf16 %v1000_v4, %v1000_v4  ;;  %2522 = vmatprep.subr.bf16.mxu1 %v2909_v3  ;;  %2497 = vmatpush3.bf16.msra.mxu0 %v3576_v53 }
 0x7a1   :  { %2502 = vmatprep.subr.bf16.mxu0 %v2909_v3 }
 0x7a2   :  { %2459 = vmatmul.mubr.bf16.vlgmr.msra.gmra.mrb[16].mxu1 %v1065_v10 }
 0x7a3   :  { %2523 = vmatpush3.bf16.msra.mxu1 %v3463_v28  ;;  %2538 = vmatprep.mubr.msk.bf16.mxu1 %vm2910_vm4, %v2909_v3 }
 0x7a4   :  { %2524 = vmatprep.subr.bf16.mxu1 %v2909_v3 }
 0x7a7   :  { %2525 = vmatpush3.bf16.msra.mxu1 %v3587_v54 }
 0x7a8   :  { %2526 = vmatprep.subr.bf16.mxu1 %v2909_v3 }
 0x7ab   :  { %2527 = vmatpush3.bf16.msra.mxu1 %v3594_v55 }
 0x7ac   :  { %2528 = vmatprep.subr.bf16.mxu1 %v2909_v3 }
 0x7af   :  { %2529 = vmatpush3.bf16.msra.mxu1 %v3601_v6 }
 0x7b0   :  { %2530 = vmatprep.subr.bf16.mxu1 %v2909_v3 }
 0x7b3   :  { %2531 = vmatpush3.bf16.msra.mxu1 %v3608_v8 }
 0x7b4   :  { %2532 = vmatprep.subr.bf16.mxu1 %v2909_v3 }
 0x7b7   :  { %2533 = vmatpush3.bf16.msra.mxu1 %v3615_v20 }
 0x7b8   :  { %2534 = vmatprep.subr.bf16.mxu1 %v2909_v3 }
 0x7bb   :  { %2535 = vmatpush3.bf16.msra.mxu1 %v3622_v23 }
 0x7bc   :  { %2536 = vmatprep.subr.bf16.mxu1 %v2909_v3 }
 0x7bf   :  { %2537 = vmatpush3.bf16.msra.mxu1 %v3629_v7 }
 0x7c0   :  { %2542 = vmatprep.subr.bf16.mxu1 %v2909_v3 }
 0x855   :  { %v1203_v24 = vpop.f32.mrb[24].mxu0 }
 0x856   :  { %v1209_v33 = vadd.f32 %v1203_v24, %v162_v22  ;;  %v2480_v36 = vpop.f32.mrb[25].mxu0  ;;  %v3690_v22 = vld [vmem:[%s3935_s5 + $0x18] sm:$0xff]  }
 0x857   :  { %v1206_v40 = vpop.f32.mrb[26].mxu0  ;;  %v3720_v36 = vld [vmem:[%s3935_s5 + $0x30] sm:$0xff]  }
 0x858   :  { %v1923_v31 = vmul.f32 -1.442695, %v1209_v33  ;;  %v2481_v60 = vpop.f32.mrb[27].mxu0  ;;  %v3711_v33 = vld [vmem:[%s3935_s5 + $0x28] sm:$0xff]  }
 0x859   :  { %v3729_v60 = vld [vmem:[%s3935_s5 + $0x38] sm:$0xff]  }
 0x85a   :  { %2841 = vpow2.f32 %v1923_v31 }
 0x864   :  { %v2842_v35 = vpop.eup %2841 }
 0x865   :  { %v1213_v62 = vadd.f32 1.0, %v2842_v35 }
 0x867   :  { %2843 = vrcp.f32 %v1213_v62 }
 0x871   :  { %v2844_v63 = vpop.eup %2843 }
 0x872   :  { %v1216_v0 = vmul.f32 2.0, %v2844_v63 }
 0x874   :  { %v1924_v37 = vadd.f32 -1.0, %v1216_v0 }
 0x875   :  { %v1140_v43 = vpop.f32.mrb[16].mxu1 }
 0x876   :  { %v2715_v9 = vadd.f32 %v3254_v17, %v1140_v43  ;;  %v2460_v57 = vpop.f32.mrb[17].mxu1  ;;  %v1218_v59 = vsel %vm3091_vm3, %v1924_v37, %v2844_v63 }
 0x877   :  { %v1143_v1 = vpop.f32.mrb[18].mxu1  ;;  %1221 = vrot.lane.b32.xlu0 %v1218_v59, %s2913_s16  ;;  %1219 = vrot.lane.b32.xlu1 %v1218_v59, %s2912_s29 }
 0x878   :  { %v1921_v2 = vmul.f32 -1.442695, %v2715_v9  ;;  %v2461_v11 = vpop.f32.mrb[19].mxu1 }
 0x87a   :  { %2845 = vpow2.f32 %v1921_v2 }
 0x87b   :  { %1223 = vrot.lane.b32.xlu1 %v1218_v59, %s2911_s28 }
 0x884   :  { %v2846_v12 = vpop.eup %2845 }
 0x885   :  { %v1150_v13 = vadd.f32 1.0, %v2846_v12 }
 0x887   :  { %2847 = vrcp.f32 %v1150_v13 }
 0x891   :  { %v2848_v16 = vpop.eup %2847 }
 0x892   :  { %v1153_v18 = vmul.f32 2.0, %v2848_v16 }
 0x894   :  { %v1922_v17 = vadd.f32 -1.0, %v1153_v18 }
 0x896   :  { %v1155_v21 = vsel %vm3091_vm3, %v1922_v17, %v2848_v16 }
 0x897   :  { %1158 = vrot.lane.b32.xlu1 %v1155_v21, %s2913_s16  ;;  %1156 = vrot.lane.b32.xlu0 %v1155_v21, %s2912_s29 }
 0x89b   :  { %1160 = vrot.lane.b32.xlu0 %v1155_v21, %s2911_s28 }
 0x8e9   :  { %v1220_v14 = vpop.permute.xlu1 %1219  ;;  %v1222_v26 = vpop.permute.xlu0 %1221 }
 0x8ea   :  { %v1225_v29 = vmul.f32 %v1222_v26, %v3497_v32  ;;  %v3671_v32 = vld [vmem:[%s3935_s5 + $0x8] sm:$0xff]  }
 0x8ed   :  { %v1224_v27 = vpop.permute.xlu1 %1223 }
 0x8ee   :  { %v1226_v61 = vmul.f32 %v1224_v27, %v1220_v14 }
 0x8f0   :  { %v3652_v34 = vadd.f32 %v1226_v61, %v1225_v29 }
 0x8f2   :  { %2849 = vtanh.f32 %v3652_v34 }
 0x8fc   :  { %v2850_v38 = vpop.eup %2849 }
 0x8fd   :  { %v1229_v39 = vmul.f32 %v2850_v38, %v1218_v59 }
 0x8ff   :  { %v1230_v41 = vpack.c.bf16 %v1229_v39, %v1229_v39 }
 0x901   :  { %2499 = vmatmul.mubr.bf16.vlgmr.msra.gmra.mrb[28].mxu0 %v1230_v41  ;;  %2539 = vmatmul.mubr.bf16.vlgmr.msra.gmra.mrb[20].mxu1 %v1230_v41 }
 0x902   :  { %2503 = vmatpush3.bf16.msra.mxu0 %v3658_v42  ;;  %2518 = vmatprep.mubr.msk.bf16.mxu0 %vm2910_vm4, %v2909_v3 }
 0x903   :  { %2504 = vmatprep.subr.bf16.mxu0 %v2909_v3  ;;  %2543 = vmatpush3.bf16.msra.mxu1 %v3507_v15 }
 0x904   :  { %2544 = vmatprep.subr.bf16.mxu1 %v2909_v3  ;;  %2558 = vmatprep.mubr.msk.bf16.mxu1 %vm2910_vm4, %v2909_v3 }
 0x906   :  { %2505 = vmatpush3.bf16.msra.mxu0 %v3671_v32 }
 0x907   :  { %2506 = vmatprep.subr.bf16.mxu0 %v2909_v3  ;;  %2545 = vmatpush3.bf16.msra.mxu1 %v3518_v46 }
 0x908   :  { %2546 = vmatprep.subr.bf16.mxu1 %v2909_v3 }
 0x909   :  { %v1157_v5 = vpop.permute.xlu0 %1156  ;;  %v1159_v45 = vpop.permute.xlu1 %1158 }
 0x90a   :  { %2507 = vmatpush3.bf16.msra.mxu0 %v3680_v44  ;;  %v1162_v4 = vmul.f32 %v1159_v45, %v3540_v25  ;;  %v3702_v25 = vld [vmem:[%s3935_s5 + $0x20] sm:$0xff]  }
 0x90b   :  { %2508 = vmatprep.subr.bf16.mxu0 %v2909_v3  ;;  %2547 = vmatpush3.bf16.msra.mxu1 %v3527_v48 }
 0x90c   :  { %2548 = vmatprep.subr.bf16.mxu1 %v2909_v3 }
 0x90d   :  { %v1161_v52 = vpop.permute.xlu0 %1160 }
 0x90e   :  { %v1163_v10 = vmul.f32 %v1161_v52, %v1157_v5  ;;  %2509 = vmatpush3.bf16.msra.mxu0 %v3690_v22 }
 0x90f   :  { %2510 = vmatprep.subr.bf16.mxu0 %v2909_v3  ;;  %2549 = vmatpush3.bf16.msra.mxu1 %v3537_v49 }
 0x910   :  { %v3695_v24 = vadd.f32 %v1163_v10, %v1162_v4  ;;  %2550 = vmatprep.subr.bf16.mxu1 %v2909_v3 }
 0x912   :  { %2851 = vtanh.f32 %v3695_v24  ;;  %2511 = vmatpush3.bf16.msra.mxu0 %v3702_v25 }
 0x913   :  { %2512 = vmatprep.subr.bf16.mxu0 %v2909_v3  ;;  %2551 = vmatpush3.bf16.msra.mxu1 %v3549_v50 }
 0x914   :  { %2552 = vmatprep.subr.bf16.mxu1 %v2909_v3 }
 0x916   :  { %2513 = vmatpush3.bf16.msra.mxu0 %v3711_v33 }
 0x917   :  { %2514 = vmatprep.subr.bf16.mxu0 %v2909_v3  ;;  %2553 = vmatpush3.bf16.msra.mxu1 %v3558_v47 }
 0x918   :  { %2554 = vmatprep.subr.bf16.mxu1 %v2909_v3 }
 0x91a   :  { %2515 = vmatpush3.bf16.msra.mxu0 %v3720_v36 }
 0x91b   :  { %2516 = vmatprep.subr.bf16.mxu0 %v2909_v3  ;;  %2555 = vmatpush3.bf16.msra.mxu1 %v3567_v51 }
 0x91c   :  { %v2852_v40 = vpop.eup %2851  ;;  %2556 = vmatprep.subr.bf16.mxu1 %v2909_v3 }
 0x91d   :  { %v1166_v31 = vmul.f32 %v2852_v40, %v1155_v21 }
 0x91e   :  { %2517 = vmatpush3.bf16.msra.mxu0 %v3729_v60 }
 0x91f   :  { %v1231_v35 = vpack.c.bf16 %v1166_v31, %v1166_v31  ;;  %2582 = vmatprep.subr.bf16.mxu0 %v2909_v3  ;;  %2557 = vmatpush3.bf16.msra.mxu1 %v3576_v53 }
 0x920   :  { %2562 = vmatprep.subr.bf16.mxu1 %v2909_v3 }
 0x921   :  { %2519 = vmatmul.mubr.bf16.vlgmr.msra.gmra.mrb[28].mxu0 %v1231_v35 }
 0x922   :  { %2583 = vmatpush3.bf16.msra.mxu0 %v3463_v28  ;;  %2598 = vmatprep.mubr.msk.bf16.mxu0 %vm2910_vm4, %v2909_v3  ;;  %v167_v28 = vadd.f32 %v3636_v19, %v3241_v56 }
 0x923   :  { %2584 = vmatprep.subr.bf16.mxu0 %v2909_v3 }
 0x926   :  { %2585 = vmatpush3.bf16.msra.mxu0 %v3587_v54 }
 0x927   :  { %2586 = vmatprep.subr.bf16.mxu0 %v2909_v3 }
 0x92a   :  { %2587 = vmatpush3.bf16.msra.mxu0 %v3594_v55 }
 0x92b   :  { %2588 = vmatprep.subr.bf16.mxu0 %v2909_v3 }
 0x92e   :  { %2589 = vmatpush3.bf16.msra.mxu0 %v3601_v6 }
 0x92f   :  { %2590 = vmatprep.subr.bf16.mxu0 %v2909_v3 }
 0x932   :  { %2591 = vmatpush3.bf16.msra.mxu0 %v3608_v8 }
 0x933   :  { %2592 = vmatprep.subr.bf16.mxu0 %v2909_v3 }
 0x936   :  { %2593 = vmatpush3.bf16.msra.mxu0 %v3615_v20 }
 0x937   :  { %2594 = vmatprep.subr.bf16.mxu0 %v2909_v3 }
 0x93a   :  { %2595 = vmatpush3.bf16.msra.mxu0 %v3622_v23 }
 0x93b   :  { %2596 = vmatprep.subr.bf16.mxu0 %v2909_v3 }
 0x93e   :  { %2597 = vmatpush3.bf16.msra.mxu0 %v3629_v7  ;;  %v3758_v7 = vld [vmem:[%s3936_s6] ss:$0 sm:$0xff] }
 0x93f   :  { %2602 = vmatprep.subr.bf16.mxu0 %v2909_v3 }
 0x9d4   :  { %v1369_v54 = vpop.f32.mrb[20].mxu1 }
 0x9d5   :  { %v1375_v55 = vadd.f32 %v1369_v54, %v167_v28  ;;  %v2540_v6 = vpop.f32.mrb[21].mxu1 }
 0x9d6   :  { %v1372_v8 = vpop.f32.mrb[22].mxu1 }
 0x9d7   :  { %v1927_v62 = vmul.f32 -1.442695, %v1375_v55  ;;  %v2541_v63 = vpop.f32.mrb[23].mxu1 }
 0x9d9   :  { %2853 = vpow2.f32 %v1927_v62 }
 0x9e3   :  { %v2854_v20 = vpop.eup %2853 }
 0x9e4   :  { %v1379_v0 = vadd.f32 1.0, %v2854_v20 }
 0x9e6   :  { %2855 = vrcp.f32 %v1379_v0 }
 0x9f0   :  { %v2856_v23 = vpop.eup %2855 }
 0x9f1   :  { %v1382_v37 = vmul.f32 2.0, %v2856_v23 }
 0x9f3   :  { %v1928_v43 = vadd.f32 -1.0, %v1382_v37 }
 0x9f4   :  { %v1306_v9 = vpop.f32.mrb[28].mxu0 }
 0x9f5   :  { %v2716_v56 = vadd.f32 %v3758_v7, %v1306_v9  ;;  %v2520_v57 = vpop.f32.mrb[29].mxu0  ;;  %v1384_v59 = vsel %vm3091_vm3, %v1928_v43, %v2856_v23 }
 0x9f6   :  { %v1309_v1 = vpop.f32.mrb[30].mxu0  ;;  %1387 = vrot.lane.b32.xlu0 %v1384_v59, %s2913_s16  ;;  %1385 = vrot.lane.b32.xlu1 %v1384_v59, %s2912_s29 }
 0x9f7   :  { %v1925_v2 = vmul.f32 -1.442695, %v2716_v56  ;;  %v2521_v11 = vpop.f32.mrb[31].mxu0 }
 0x9f9   :  { %2857 = vpow2.f32 %v1925_v2 }
 0x9fa   :  { %1389 = vrot.lane.b32.xlu1 %v1384_v59, %s2911_s28 }
 0xa03   :  { %v2858_v12 = vpop.eup %2857 }
 0xa04   :  { %v1316_v13 = vadd.f32 1.0, %v2858_v12 }
 0xa06   :  { %2859 = vrcp.f32 %v1316_v13 }
 0xa10   :  { %v2860_v16 = vpop.eup %2859 }
 0xa11   :  { %v1319_v18 = vmul.f32 2.0, %v2860_v16 }
 0xa13   :  { %v1926_v17 = vadd.f32 -1.0, %v1319_v18 }
 0xa15   :  { %v1321_v21 = vsel %vm3091_vm3, %v1926_v17, %v2860_v16 }
 0xa16   :  { %1322 = vrot.lane.b32.xlu0 %v1321_v21, %s2912_s29  ;;  %1324 = vrot.lane.b32.xlu1 %v1321_v21, %s2913_s16 }
 0xa1a   :  { %1326 = vrot.lane.b32.xlu0 %v1321_v21, %s2911_s28 }
 0xa68   :  { %v1386_v14 = vpop.permute.xlu1 %1385  ;;  %v1388_v26 = vpop.permute.xlu0 %1387 }
 0xa69   :  { %v1391_v29 = vmul.f32 %v1388_v26, %v3652_v34 }
 0xa6c   :  { %v1390_v27 = vpop.permute.xlu1 %1389 }
 0xa6d   :  { %v1392_v61 = vmul.f32 %v1390_v27, %v1386_v14 }
 0xa6f   :  { %v3772_v38 = vadd.f32 %v1392_v61, %v1391_v29  ;;  %v2915_v61 = vmov 0.0|0.0  }
 0xa71   :  { %2861 = vtanh.f32 %v3772_v38 }
 0xa7b   :  { %v2862_v39 = vpop.eup %2861 }
 0xa7c   :  { %v1395_v41 = vmul.f32 %v2862_v39, %v1384_v59 }
 0xa7e   :  { %v1396_v5 = vpack.c.bf16 %v1395_v41, %v1395_v41  ;;  %v1669_v41 = vld [vmem:[%s3937_s7 + $0x20] sm:$0xff] }
 0xa80   :  { %2559 = vmatmul.mubr.bf16.vlgmr.msra.gmra.mrb[24].mxu1 %v1396_v5  ;;  %2599 = vmatmul.mubr.bf16.vlgmr.msra.gmra.mrb[32].mxu0 %v1396_v5  ;;  %v1670_v5 = vld [vmem:[%s3937_s7 + $0x28] sm:$0xff] }
 0xa81   :  { %2563 = vmatpush3.bf16.msra.mxu1 %v3658_v42  ;;  %2578 = vmatprep.mubr.msk.bf16.mxu1 %vm2910_vm4, %v2909_v3 }
 0xa82   :  { %2564 = vmatprep.subr.bf16.mxu1 %v2909_v3  ;;  %2603 = vmatpush3.bf16.msra.mxu0 %v3507_v15 }
 0xa83   :  { %2604 = vmatprep.subr.bf16.mxu0 %v2909_v3  ;;  %2618 = vmatprep.mubr.msk.bf16.mxu0 %vm2910_vm4, %v2909_v3 }
 0xa85   :  { %2565 = vmatpush3.bf16.msra.mxu1 %v3671_v32 }
 0xa86   :  { %2566 = vmatprep.subr.bf16.mxu1 %v2909_v3  ;;  %2605 = vmatpush3.bf16.msra.mxu0 %v3518_v46 }
 0xa87   :  { %2606 = vmatprep.subr.bf16.mxu0 %v2909_v3 }
 0xa88   :  { %v1323_v34 = vpop.permute.xlu0 %1322  ;;  %v1325_v45 = vpop.permute.xlu1 %1324 }
 0xa89   :  { %2567 = vmatpush3.bf16.msra.mxu1 %v3680_v44  ;;  %v1328_v52 = vmul.f32 %v1325_v45, %v3695_v24 }
 0xa8a   :  { %2568 = vmatprep.subr.bf16.mxu1 %v2909_v3  ;;  %2607 = vmatpush3.bf16.msra.mxu0 %v3527_v48 }
 0xa8b   :  { %2608 = vmatprep.subr.bf16.mxu0 %v2909_v3 }
 0xa8c   :  { %v1327_v15 = vpop.permute.xlu0 %1326 }
 0xa8d   :  { %v1329_v4 = vmul.f32 %v1327_v15, %v1323_v34  ;;  %2569 = vmatpush3.bf16.msra.mxu1 %v3690_v22  ;;  %v2691_v34 = vpack.c.bf16 %v1670_v5, %v1669_v41 }
 0xa8e   :  { %2570 = vmatprep.subr.bf16.mxu1 %v2909_v3  ;;  %2609 = vmatpush3.bf16.msra.mxu0 %v3537_v49 }
 0xa8f   :  { %v3795_v46 = vadd.f32 %v1329_v4, %v1328_v52  ;;  %2610 = vmatprep.subr.bf16.mxu0 %v2909_v3 }
 0xa91   :  { %2863 = vtanh.f32 %v3795_v46  ;;  %2571 = vmatpush3.bf16.msra.mxu1 %v3702_v25 }
 0xa92   :  { %2572 = vmatprep.subr.bf16.mxu1 %v2909_v3  ;;  %2611 = vmatpush3.bf16.msra.mxu0 %v3549_v50 }
 0xa93   :  { %2612 = vmatprep.subr.bf16.mxu0 %v2909_v3 }
 0xa95   :  { %2573 = vmatpush3.bf16.msra.mxu1 %v3711_v33 }
 0xa96   :  { %2574 = vmatprep.subr.bf16.mxu1 %v2909_v3  ;;  %2613 = vmatpush3.bf16.msra.mxu0 %v3558_v47  ;;  %v170_v47 = vadd.f32 %v3636_v19, %v3245_v58 }
 0xa97   :  { %2614 = vmatprep.subr.bf16.mxu0 %v2909_v3 }
 0xa99   :  { %2575 = vmatpush3.bf16.msra.mxu1 %v3720_v36 }
 0xa9a   :  { %2576 = vmatprep.subr.bf16.mxu1 %v2909_v3  ;;  %2615 = vmatpush3.bf16.msra.mxu0 %v3567_v51 }
 0xa9b   :  { %v2864_v48 = vpop.eup %2863  ;;  %2616 = vmatprep.subr.bf16.mxu0 %v2909_v3 }
 0xa9c   :  { %v1332_v49 = vmul.f32 %v2864_v48, %v1321_v21 }
 0xa9d   :  { %2577 = vmatpush3.bf16.msra.mxu1 %v3729_v60 }
 0xa9e   :  { %v1397_v50 = vpack.c.bf16 %v1332_v49, %v1332_v49  ;;  %2617 = vmatpush3.bf16.msra.mxu0 %v3576_v53  ;;  %2684 = vmatprep.subr.bf16.mxu1 %v2915_v61 }
 0xa9f   :  { %2622 = vmatprep.subr.bf16.mxu0 %v2909_v3 }
 0xaa0   :  { %2579 = vmatmul.mubr.bf16.vlgmr.msra.gmra.mrb[24].mxu1 %v1397_v50 }
 0xaa1   :  { %2674 = vmatprep.mubr.msk.f32.mxu1 %vm2910_vm4, %v2909_v3 }
 0xb53   :  { %v1535_v10 = vpop.f32.mrb[32].mxu0 }
 0xb54   :  { %v1541_v51 = vadd.f32 %v1535_v10, %v170_v47  ;;  %v2600_v24 = vpop.f32.mrb[33].mxu0  ;;  %v1671_v47 = vld [vmem:[%s3937_s7 + $0x30] sm:$0xff]  ;;  %v1672_v10 = vld [vmem:[%s3937_s7 + $0x38] sm:$0xff] }
 0xb55   :  { %v1538_v40 = vpop.f32.mrb[34].mxu0  ;;  %v1674_v24 = vld [vmem:[%s3937_s7 + $0x48] sm:$0xff] }
 0xb56   :  { %v1931_v31 = vmul.f32 -1.442695, %v1541_v51  ;;  %v2601_v35 = vpop.f32.mrb[35].mxu0  ;;  %v2694_v51 = vpack.c.bf16 %v1672_v10, %v1671_v47 }
 0xb57   :  { %v1675_v35 = vld [vmem:[%s3937_s7 + $0x50] sm:$0xff] }
 0xb58   :  { %2865 = vpow2.f32 %v1931_v31 }
 0xb62   :  { %v2866_v28 = vpop.eup %2865 }
 0xb63   :  { %v1545_v54 = vadd.f32 1.0, %v2866_v28  ;;  %v1676_v28 = vld [vmem:[%s3937_s7 + $0x58] sm:$0xff] }
 0xb65   :  { %2867 = vrcp.f32 %v1545_v54 }
 0xb6f   :  { %v2868_v53 = vpop.eup %2867 }
 0xb70   :  { %v1548_v55 = vmul.f32 2.0, %v2868_v53 }
 0xb72   :  { %v1932_v6 = vadd.f32 -1.0, %v1548_v55  ;;  %v1677_v55 = vld [vmem:[%s3937_s7 + $0x60] sm:$0xff] }
 0xb73   :  { %v1472_v8 = vpop.f32.mrb[24].mxu1 }
 0xb74   :  { %v2717_v62 = vadd.f32 %v3758_v7, %v1472_v8  ;;  %v2580_v63 = vpop.f32.mrb[25].mxu1  ;;  %v1550_v58 = vsel %vm3091_vm3, %v1932_v6, %v2868_v53  ;;  %v2700_v53 = vpack.c.bf16 %v1676_v28, %v1675_v35  ;;  %v1678_v6 = vld [vmem:[%s3937_s7 + $0x68] sm:$0xff] }
 0xb75   :  { %v1475_v19 = vpop.f32.mrb[26].mxu1  ;;  %1553 = vrot.lane.b32.xlu0 %v1550_v58, %s2913_s16  ;;  %1551 = vrot.lane.b32.xlu1 %v1550_v58, %s2912_s29  ;;  %v1679_v63 = vld [vmem:[%s3937_s7 + $0x70] sm:$0xff] }
 0xb76   :  { %v1929_v20 = vmul.f32 -1.442695, %v2717_v62  ;;  %v2581_v0 = vpop.f32.mrb[27].mxu1  ;;  %v2703_v62 = vpack.c.bf16 %v1678_v6, %v1677_v55 }
 0xb78   :  { %2869 = vpow2.f32 %v1929_v20 }
 0xb79   :  { %1555 = vrot.lane.b32.xlu1 %v1550_v58, %s2911_s28 }
 0xb82   :  { %v2870_v23 = vpop.eup %2869 }
 0xb83   :  { %v1482_v37 = vadd.f32 1.0, %v2870_v23 }
 0xb85   :  { %2871 = vrcp.f32 %v1482_v37 }
 0xb8f   :  { %v2872_v43 = vpop.eup %2871 }
 0xb90   :  { %v1485_v9 = vmul.f32 2.0, %v2872_v43 }
 0xb92   :  { %v1930_v56 = vadd.f32 -1.0, %v1485_v9 }
 0xb94   :  { %v1487_v57 = vsel %vm3091_vm3, %v1930_v56, %v2872_v43 }
 0xb95   :  { %1490 = vrot.lane.b32.xlu1 %v1487_v57, %s2913_s16  ;;  %1488 = vrot.lane.b32.xlu0 %v1487_v57, %s2912_s29 }
 0xb99   :  { %1492 = vrot.lane.b32.xlu0 %v1487_v57, %s2911_s28 }
 0xbe7   :  { %v1552_v59 = vpop.permute.xlu1 %1551  ;;  %v1554_v1 = vpop.permute.xlu0 %1553 }
 0xbe8   :  { %v1557_v11 = vmul.f32 %v1554_v1, %v3772_v38  ;;  %v1760_v1 = vld [vmem:[%s3938_s9 + $0x8] sm:$0xff] }
 0xbeb   :  { %v1556_v2 = vpop.permute.xlu1 %1555 }
 0xbec   :  { %v1558_v12 = vmul.f32 %v1556_v2, %v1552_v59  ;;  %v1759_v59 = vld [vmem:[%s3938_s9] sm:$0xff] }
 0xbed   :  { %v2709_v2 = vpack.c.bf16 %v1760_v1, %v1759_v59 }
 0xbee   :  { %v1559_v13 = vadd.f32 %v1558_v12, %v1557_v11  ;;  %v1935_v11 = vld [vmem:[%s3939_s8] ss:$0 sm:$0xff] }
 0xbf0   :  { %2873 = vtanh.f32 %v1559_v13 }
 0xbfa   :  { %v2874_v16 = vpop.eup %2873 }
 0xbfb   :  { %v1561_v18 = vmul.f32 %v2874_v16, %v1550_v58  ;;  %v1680_v58 = vld [vmem:[%s3937_s7 + $0x78] sm:$0xff] }
 0xbfc   :  { %v2706_v20 = vpack.c.bf16 %v1680_v58, %v1679_v63 }
 0xbfd   :  { %v1562_v17 = vpack.c.bf16 %v1561_v18, %v1561_v18 }
 0xbff   :  { %2619 = vmatmul.mubr.bf16.vlgmr.msra.gmra.mrb[36].mxu0 %v1562_v17  ;;  %v1936_v17 = vld [vmem:[%s3941_s10] ss:$0 sm:$0xff] }
 0xc00   :  { %2623 = vmatpush3.bf16.msra.mxu0 %v3658_v42  ;;  %2638 = vmatprep.mubr.msk.bf16.mxu0 %vm2910_vm4, %v2909_v3 }
 0xc01   :  { %2624 = vmatprep.subr.bf16.mxu0 %v2909_v3 }
 0xc04   :  { %2625 = vmatpush3.bf16.msra.mxu0 %v3671_v32 }
 0xc05   :  { %2626 = vmatprep.subr.bf16.mxu0 %v2909_v3 }
 0xc07   :  { %v1489_v21 = vpop.permute.xlu0 %1488  ;;  %v1491_v14 = vpop.permute.xlu1 %1490 }
 0xc08   :  { %2627 = vmatpush3.bf16.msra.mxu0 %v3680_v44  ;;  %v1494_v27 = vmul.f32 %v1491_v14, %v3795_v46 }
 0xc09   :  { %2628 = vmatprep.subr.bf16.mxu0 %v2909_v3 }
 0xc0b   :  { %v1493_v26 = vpop.permute.xlu0 %1492 }
 0xc0c   :  { %v1495_v29 = vmul.f32 %v1493_v26, %v1489_v21  ;;  %2629 = vmatpush3.bf16.msra.mxu0 %v3690_v22 }
 0xc0d   :  { %2630 = vmatprep.subr.bf16.mxu0 %v2909_v3 }
 0xc0e   :  { %v3841_v42 = vadd.f32 %v1495_v29, %v1494_v27  ;;  %v1938_v27 = vld [vmem:[%s3942_s11] ss:$0 sm:$0xff] }
 0xc10   :  { %2875 = vtanh.f32 %v3841_v42  ;;  %2631 = vmatpush3.bf16.msra.mxu0 %v3702_v25  ;;  %v1665_v25 = vld [vmem:[%s3937_s7] sm:$0xff] }
 0xc11   :  { %2632 = vmatprep.subr.bf16.mxu0 %v2909_v3 }
 0xc14   :  { %2633 = vmatpush3.bf16.msra.mxu0 %v3711_v33  ;;  %v1666_v33 = vld [vmem:[%s3937_s7 + $0x8] sm:$0xff] }
 0xc15   :  { %2634 = vmatprep.subr.bf16.mxu0 %v2909_v3  ;;  %v2685_v38 = vpack.c.bf16 %v1666_v33, %v1665_v25 }
 0xc17   :  { %2686 = vmatpush3.bf16.msra.mxu1 %v2685_v38 }
 0xc18   :  { %2635 = vmatpush3.bf16.msra.mxu0 %v3720_v36  ;;  %v1667_v36 = vld [vmem:[%s3937_s7 + $0x10] sm:$0xff]  ;;  %2687 = vmatprep.subr.bf16.mxu1 %v2915_v61 }
 0xc19   :  { %2636 = vmatprep.subr.bf16.mxu0 %v2909_v3 }
 0xc1a   :  { %v2876_v32 = vpop.eup %2875 }
 0xc1b   :  { %v1498_v44 = vmul.f32 %v2876_v32, %v1487_v57 }
 0xc1c   :  { %2637 = vmatpush3.bf16.msra.mxu0 %v3729_v60  ;;  %v1668_v60 = vld [vmem:[%s3937_s7 + $0x18] sm:$0xff] }
 0xc1d   :  { %v1563_v22 = vpack.c.bf16 %v1498_v44, %v1498_v44  ;;  %v2688_v39 = vpack.c.bf16 %v1668_v60, %v1667_v36 }
 0xc1f   :  { %2639 = vmatmul.mubr.bf16.vlgmr.msra.gmra.mrb[36].mxu0 %v1563_v22  ;;  %2689 = vmatpush3.bf16.msra.mxu1 %v2688_v39 }
 0xc20   :  { %2690 = vmatprep.subr.bf16.mxu1 %v2915_v61 }
 0xc23   :  { %2692 = vmatpush3.bf16.msra.mxu1 %v2691_v34 }
 0xc24   :  { %2693 = vmatprep.subr.bf16.mxu1 %v2915_v61 }
 0xc27   :  { %2695 = vmatpush3.bf16.msra.mxu1 %v2694_v51 }
 0xc28   :  { %2696 = vmatprep.subr.bf16.mxu1 %v2915_v61 }
 0xcf2   :  { %v1638_v45 = vpop.f32.mrb[36].mxu0 }
 0xcf3   :  { %v2718_v15 = vadd.f32 %v3758_v7, %v1638_v45  ;;  %v2640_v52 = vpop.f32.mrb[37].mxu0  ;;  %v1673_v7 = vld [vmem:[%s3937_s7 + $0x40] sm:$0xff] }
 0xcf4   :  { %v1641_v4 = vpop.f32.mrb[38].mxu0  ;;  %v2697_v40 = vpack.c.bf16 %v1674_v24, %v1673_v7 }
 0xcf5   :  { %v1933_v46 = vmul.f32 -1.442695, %v2718_v15  ;;  %v2641_v48 = vpop.f32.mrb[39].mxu0 }
 0xcf6   :  { %2698 = vmatpush3.bf16.msra.mxu1 %v2697_v40 }
 0xcf7   :  { %2877 = vpow2.f32 %v1933_v46  ;;  %2699 = vmatprep.subr.bf16.mxu1 %v2915_v61 }
 0xcfa   :  { %2701 = vmatpush3.bf16.msra.mxu1 %v2700_v53 }
 0xcfb   :  { %2702 = vmatprep.subr.bf16.mxu1 %v2915_v61 }
 0xcfe   :  { %2704 = vmatpush3.bf16.msra.mxu1 %v2703_v62 }
 0xcff   :  { %2705 = vmatprep.subr.bf16.mxu1 %v2915_v61 }
 0xd01   :  { %v2878_v49 = vpop.eup %2877 }
 0xd02   :  { %v1648_v50 = vadd.f32 1.0, %v2878_v49  ;;  %2707 = vmatpush3.bf16.msra.mxu1 %v2706_v20 }
 0xd03   :  { %2708 = vmatprep.subr.bf16.mxu1 %v2915_v61 }
 0xd04   :  { %2879 = vrcp.f32 %v1648_v50 }
 0xd0e   :  { %v2880_v31 = vpop.eup %2879 }
 0xd0f   :  { %v1651_v54 = vmul.f32 2.0, %v2880_v31 }
 0xd11   :  { %v1934_v8 = vadd.f32 -1.0, %v1651_v54 }
 0xd13   :  { %v1653_v19 = vsel %vm3091_vm3, %v1934_v8, %v2880_v31 }
 0xd14   :  { %1656 = vrot.lane.b32.xlu0 %v1653_v19, %s2913_s16  ;;  %1654 = vrot.lane.b32.xlu1 %v1653_v19, %s2912_s29 }
 0xd18   :  { %1658 = vrot.lane.b32.xlu1 %v1653_v19, %s2911_s28 }
 0xd86   :  { %v1655_v0 = vpop.permute.xlu1 %1654  ;;  %v1657_v23 = vpop.permute.xlu0 %1656 }
 0xd87   :  { %v1660_v43 = vmul.f32 %v1657_v23, %v3841_v42 }
 0xd8a   :  { %v1659_v37 = vpop.permute.xlu1 %1658 }
 0xd8b   :  { %v1661_v9 = vmul.f32 %v1659_v37, %v1655_v0 }
 0xd8d   :  { %v1662_v56 = vadd.f32 %v1661_v9, %v1660_v43 }
 0xd8f   :  { %2881 = vtanh.f32 %v1662_v56 }
 0xd99   :  { %v2882_v30 = vpop.eup %2881 }
 0xd9a   :  { %v1664_v57 = vmul.f32 %v2882_v30, %v1653_v19 }
 0xd9c   :  { %2675 = vmatmul.mubr.f32.vlgmr.msra.gmra.mrb[28].mxu1 %v1664_v57 }
 0xd9d   :  { %2681 = vmatprep.mubr.msk.f32.mxu1 %vm2910_vm4, %v2909_v3  ;;  %2710 = vmatpush3.bf16.msra.mxu1 %v2709_v2  ;;  %v18_v3 = vstv %s3940_s12 }
 0xd9e   :  { %19 = vst [vmem:[#allocation3] sm:$0x1] %v18_v3 }
 0xda5   :  { %v1939_v44 = vld [vmem:[#allocation3] ss:$0 sm:$0xff] }
 0xe6f   :  { %v1754_v12 = vpop.f32.mrb[28].mxu1 }
 0xe70   :  { %v1755_v13 = vadd.f32 %v1935_v11, %v1754_v12  ;;  %v2676_v16 = vpop.f32.mrb[29].mxu1 }
 0xe72   :  { %v1758_v18 = vmax.f32 %v1755_v13, 0.0 }
 0xe74   :  { %2682 = vmatmul.mubr.msk.f32.vlgmr.msra.gmra.mrb[30].mxu1 %vm95_vm0, %v1758_v18 }
 0xf47   :  { %v1837_v21 = vpop.f32.mrb[30].mxu1 }
 0xf48   :  { %v1838_v14 = vadd.f32 %v1936_v17, %v1837_v21  ;;  %v2683_v26 = vpop.f32.mrb[31].mxu1 }
 0xf4a   :  { %v1841_v29 = vmax.f32 %v1838_v14, 0.0 }
 0xf4c   :  { %v1849_v42 = vmul.f32 %v1938_v27, %v1841_v29 }
 0xf4e   :  { %v1851_v32 = vsel %vm1850_vm5, %v1849_v42, 0.0 }
 0xf4f   :  { %1852 = vadd.xlane.f32.xlu0 %v1851_v32 }
 0xfdc   :  { %v1853_v22 = vpop.xlane.xlu0 %1852 }
 0xfdd   :  { %v1861_v61 = vadd.f32 %v1939_v44, %v1853_v22 }
 0xfdf   :  { %1863 = vst.msk [vmem:[%s3943_s13] sm:$0xff] %vm1862_vm6, %v1861_v61 }

</bundles_post_ra>
